<compile_context>
chip_gen: v7x
topology: tpu7x:2x2x1
jax: 0.10.0
libtpu: 0.0.40
codegen_flags: <defaults>
</compile_context>

<pallas_src>
import functools
import math

import jax
import jax.numpy as jnp
from jax.experimental import pallas as pl
from jax.experimental.pallas import tpu as pltpu


def _transformer_kernel(x_ref, ln1_g, ln1_b, wqkv, bqkv, wo_h, bo,
                        ln2_g, ln2_b, wfc, bfc, wproj, bproj, y_ref,
                        *, d_model, n_head, nb, seq_len):
    D, H, L = d_model, n_head, seq_len
    hd = D // H
    R = nb * L

    x = x_ref[...].astype(jnp.float32)                        # (R, D)

    def layernorm(v, g, b):
        mu = jnp.mean(v, axis=-1, keepdims=True)
        var = jnp.mean((v - mu) ** 2, axis=-1, keepdims=True)
        return (v - mu) * jax.lax.rsqrt(var + 1e-5) * g + b

    # ---------------- self-attention branch ----------------
    h1 = layernorm(x, ln1_g[...], ln1_b[...])
    # Fused QKV projection: single large K=D matmul, bf16 in / f32 accumulate.
    # (q-part of wqkv/bqkv is pre-scaled by 1/sqrt(hd) on the host.)
    qkv = jnp.dot(h1.astype(jnp.bfloat16), wqkv[...],
                  preferred_element_type=jnp.float32) + bqkv[...]      # (R, 3D)
    qkv_bf = qkv.astype(jnp.bfloat16)

    # Head-outer / batch-inner loop: per head, softmax(QK^T)V is computed per
    # batch element (L x L scores), but the out-projection for that head is a
    # single (R, hd) @ (hd, D) matmul over all nb batch elements.
    # TODO(synk): for very large nb*H, switch to lax.fori_loop + pl.ds slices
    # to bound vreg live ranges.
    attn_acc = jnp.zeros((R, D), jnp.float32)
    for hh in range(H):                       # attention heads
        c0 = hh * hd
        ho_parts = []
        for b in range(nb):                   # batch elements in this block
            r0 = b * L
            qh = qkv_bf[r0:r0 + L, c0:c0 + hd]                      # (L, hd)
            kh = qkv_bf[r0:r0 + L, D + c0:D + c0 + hd]              # (L, hd)
            vh = qkv_bf[r0:r0 + L, 2 * D + c0:2 * D + c0 + hd]      # (L, hd)
            s = jax.lax.dot_general(qh, kh, (((1,), (1,)), ((), ())),
                                    preferred_element_type=jnp.float32)  # (L, L)
            s = s - jnp.max(s, axis=-1, keepdims=True)
            p = jnp.exp(s)
            inv = pl.reciprocal(jnp.sum(p, axis=-1, keepdims=True), approx=True)
            ho_parts.append(jnp.dot(p.astype(jnp.bfloat16), vh,
                                    preferred_element_type=jnp.float32) * inv)
        ho_full = ho_parts[0] if nb == 1 else jnp.concatenate(ho_parts, axis=0)
        # Fold the head concat away: accumulate head_out @ Wo[h] directly.
        attn_acc = attn_acc + jnp.dot(ho_full.astype(jnp.bfloat16), wo_h[hh],
                                      preferred_element_type=jnp.float32)  # (R, D)
    x1 = x + attn_acc + bo[...]

    # ---------------- MLP branch ----------------
    h2 = layernorm(x1, ln2_g[...], ln2_b[...])
    fc = jnp.dot(h2.astype(jnp.bfloat16), wfc[...],
                 preferred_element_type=jnp.float32) + bfc[...]          # (R, 4D)
    fc = fc * jax.nn.sigmoid(1.702 * fc)                                 # QuickGELU (f32 / EUP)
    mlp = jnp.dot(fc.astype(jnp.bfloat16), wproj[...],
                  preferred_element_type=jnp.float32) + bproj[...]

    y_ref[...] = (x1 + mlp).astype(y_ref.dtype)


def _pick_batch_block(n_batch, seq_len, target_rows=512):
    """Batch elements per grid step: feed the MXU a few hundred rows while
    keeping >=2 grid steps when possible (both v7x TensorCores busy)."""
    divisors = [d for d in range(1, n_batch + 1) if n_batch % d == 0]
    cands = [d for d in divisors if n_batch // d >= 2 and d * seq_len <= target_rows]
    if not cands:
        cands = [d for d in divisors if d * seq_len <= target_rows] or [1]
    return max(cands)


def _prepare_params(params, d_model, n_head):
    """Host-side prep: fold 1/sqrt(hd) into the q projection, pre-split the
    output projection per head, cast matmul weights to bf16 (halves weight DMA
    bytes and VMEM footprint; f32 accumulation keeps accuracy)."""
    D, H = d_model, n_head
    hd = D // H
    scale = 1.0 / math.sqrt(hd)
    f32, bf16 = jnp.float32, jnp.bfloat16

    wqkv = params["wqkv_t"].astype(f32).at[:, :D].multiply(scale)
    bqkv = params["bqkv"].astype(f32).at[:, :D].multiply(scale)
    wo_heads = params["wo_t"].reshape(H, hd, D)          # rows grouped per head

    return [
        params["ln1_g"].astype(f32), params["ln1_b"].astype(f32),
        wqkv.astype(bf16), bqkv,
        wo_heads.astype(bf16), params["bo"].astype(f32),
        params["ln2_g"].astype(f32), params["ln2_b"].astype(f32),
        params["wfc_t"].astype(bf16), params["bfc"].astype(f32),
        params["wproj_t"].astype(bf16), params["bproj"].astype(f32),
    ]


def _vmem_limit_bytes(nb, L, D):
    R = nb * L
    weights = 2 * (3 * D * D + D * D + 4 * D * D + 4 * D * D)   # bf16 weights
    weights *= 2                                                # Pallas double-buffers blocks
    acts = 4 * R * (2 * D + 3 * D + 4 * D + 2 * D)              # rough f32 activation slabs
    io = 2 * 2 * R * D * 4                                      # double-buffered x/y blocks
    est = weights + acts + io + (1 << 20)
    return int(min(64 * 2 ** 20, max(32 * 2 ** 20, est)))


def transformer_forward(x_lnd, params, n_head):
    """x_lnd: (L, N, D), matching PyTorch nn.MultiheadAttention (batch_first=False)."""
    L, N, D = x_lnd.shape
    assert D % n_head == 0
    nb = _pick_batch_block(N, L)
    grid = (N // nb,)

    # TODO(synk): fold this layout change into the kernel (block (L, nb, D) +
    # in-VMEM swap) to avoid two full HBM round trips on the activations.
    x = jnp.transpose(x_lnd, (1, 0, 2)).reshape(N * L, D)       # batch-major rows

    plist = _prepare_params(params, D, n_head)
    kernel = functools.partial(_transformer_kernel, d_model=D, n_head=n_head,
                               nb=nb, seq_len=L)

    in_specs = [pl.BlockSpec((nb * L, D), lambda n: (n, 0))]
    for p in plist:
        # Grid-invariant params: whole-array blocks (index_map always 0), so the
        # pipeline fetches them once and revisits the same VMEM buffer.
        in_specs.append(pl.BlockSpec(p.shape, lambda n, nd=p.ndim: (0,) * nd))

    out = pl.pallas_call(
        kernel,
        out_shape=jax.ShapeDtypeStruct((N * L, D), x_lnd.dtype),
        grid=grid,
        in_specs=in_specs,
        out_specs=pl.BlockSpec((nb * L, D), lambda n: (n, 0)),
        compiler_params=pltpu.CompilerParams(
            dimension_semantics=("parallel",),
            vmem_limit_bytes=_vmem_limit_bytes(nb, L, D),
        ),
    )(x, *plist)
    return jnp.transpose(out.reshape(N, L, D), (1, 0, 2))       # back to (L, N, D)


def init_params(key, d_model):
    """Deterministic synthetic parameters (weights stored pre-transposed, f32)."""
    ks = jax.random.split(key, 6)
    D = d_model
    scale = 0.05
    return {
        "ln1_g": jnp.ones((1, D), jnp.float32),
        "ln1_b": jnp.zeros((1, D), jnp.float32),
        "wqkv_t": scale * jax.random.normal(ks[0], (D, 3 * D), jnp.float32),
        "bqkv": scale * jax.random.normal(ks[1], (1, 3 * D), jnp.float32),
        "wo_t": scale * jax.random.normal(ks[2], (D, D), jnp.float32),
        "bo": jnp.zeros((1, D), jnp.float32),
        "ln2_g": jnp.ones((1, D), jnp.float32),
        "ln2_b": jnp.zeros((1, D), jnp.float32),
        "wfc_t": scale * jax.random.normal(ks[3], (D, 4 * D), jnp.float32),
        "bfc": scale * jax.random.normal(ks[4], (1, 4 * D), jnp.float32),
        "wproj_t": scale * jax.random.normal(ks[5], (4 * D, D), jnp.float32),
        "bproj": jnp.zeros((1, D), jnp.float32),
    }


def ref_forward(x, p, n_head):
    """Pure-JAX f32 reference matching PyTorch semantics exactly (x: (L, N, D))."""
    L, N, D = x.shape
    hd = D // n_head

    def ln(v, g, b):
        mu = v.mean(-1, keepdims=True)
        var = ((v - mu) ** 2).mean(-1, keepdims=True)
        return (v - mu) / jnp.sqrt(var + 1e-5) * g + b

    h = ln(x, p["ln1_g"][0], p["ln1_b"][0])
    qkv = h @ p["wqkv_t"] + p["bqkv"][0]          # (L, N, 3D)
    q, k, v = jnp.split(qkv, 3, axis=-1)

    def heads(t):  # (L, N, D) -> (N, H, L, hd)
        return t.reshape(L, N, n_head, hd).transpose(1, 2, 0, 3)

    qh, kh, vh = heads(q), heads(k), heads(v)
    s = jnp.einsum("nhld,nhmd->nhlm", qh, kh) / jnp.sqrt(hd)
    pm = jax.nn.softmax(s, axis=-1)
    o = jnp.einsum("nhlm,nhmd->nhld", pm, vh)
    o = o.transpose(2, 0, 1, 3).reshape(L, N, D)
    attn = o @ p["wo_t"] + p["bo"][0]
    x1 = x + attn

    h2 = ln(x1, p["ln2_g"][0], p["ln2_b"][0])
    fc = h2 @ p["wfc_t"] + p["bfc"][0]
    fc = fc * jax.nn.sigmoid(1.702 * fc)
    mlp = fc @ p["wproj_t"] + p["bproj"][0]
    return x1 + mlp


if __name__ == "__main__":
    d_model, n_head = 32, 8
    L, N = 8, 4          # N=4 exercises both batch-blocking (nb=2) and a 2-step grid

    key = jax.random.PRNGKey(0)
    kx, kp = jax.random.split(key)
    x = jax.random.normal(kx, (L, N, d_model), jnp.float32)
    params = init_params(kp, d_model)

    out = jax.block_until_ready(transformer_forward(x, params, n_head))
    ref = ref_forward(x, params, n_head)

    assert out.shape == (L, N, d_model)
    max_err = float(jnp.max(jnp.abs(out - ref)))
    # bf16 matmul inputs/weights (f32 accumulation) vs. the f32 reference:
    # use a correspondingly relaxed tolerance.
    if max_err > 5e-2:
        raise AssertionError(f"Pallas kernel mismatch vs reference: max_err={max_err}")

    print("KERNEL_OK")
</pallas_src>

<mosaic_0001>
module attributes {stable_mosaic.version = 11 : i64} {
  func.func @_transformer_kernel(%arg0: i32, %arg1: memref<16x32xf32, #tpu.memory_space<vmem>>, %arg2: memref<1x32xf32, #tpu.memory_space<vmem>>, %arg3: memref<1x32xf32, #tpu.memory_space<vmem>>, %arg4: memref<32x96xbf16, #tpu.memory_space<vmem>>, %arg5: memref<1x96xf32, #tpu.memory_space<vmem>>, %arg6: memref<8x4x32xbf16, #tpu.memory_space<vmem>>, %arg7: memref<1x32xf32, #tpu.memory_space<vmem>>, %arg8: memref<1x32xf32, #tpu.memory_space<vmem>>, %arg9: memref<1x32xf32, #tpu.memory_space<vmem>>, %arg10: memref<32x128xbf16, #tpu.memory_space<vmem>>, %arg11: memref<1x128xf32, #tpu.memory_space<vmem>>, %arg12: memref<128x32xbf16, #tpu.memory_space<vmem>>, %arg13: memref<1x32xf32, #tpu.memory_space<vmem>>, %arg14: memref<16x32xf32, #tpu.memory_space<vmem>>) attributes {dimension_semantics = [#tpu.dimension_semantics<parallel>], iteration_bounds = array<i64: 2>, scalar_prefetch = 0 : i64, scratch_operands = 0 : i64, tpu.core_type = #tpu.core_type<tc>, window_params = [{transform_indices = @transform_0, window_bounds = array<i64: 16, 32>}, {pipeline_mode = #tpu.pipeline_mode<synchronous>, transform_indices = @transform_1, window_bounds = array<i64: 1, 32>}, {pipeline_mode = #tpu.pipeline_mode<synchronous>, transform_indices = @transform_2, window_bounds = array<i64: 1, 32>}, {pipeline_mode = #tpu.pipeline_mode<synchronous>, transform_indices = @transform_3, window_bounds = array<i64: 32, 96>}, {pipeline_mode = #tpu.pipeline_mode<synchronous>, transform_indices = @transform_4, window_bounds = array<i64: 1, 96>}, {pipeline_mode = #tpu.pipeline_mode<synchronous>, transform_indices = @transform_5, window_bounds = array<i64: 8, 4, 32>}, {pipeline_mode = #tpu.pipeline_mode<synchronous>, transform_indices = @transform_6, window_bounds = array<i64: 1, 32>}, {pipeline_mode = #tpu.pipeline_mode<synchronous>, transform_indices = @transform_7, window_bounds = array<i64: 1, 32>}, {pipeline_mode = #tpu.pipeline_mode<synchronous>, transform_indices = @transform_8, window_bounds = array<i64: 1, 32>}, {pipeline_mode = #tpu.pipeline_mode<synchronous>, transform_indices = @transform_9, window_bounds = array<i64: 32, 128>}, {pipeline_mode = #tpu.pipeline_mode<synchronous>, transform_indices = @transform_10, window_bounds = array<i64: 1, 128>}, {pipeline_mode = #tpu.pipeline_mode<synchronous>, transform_indices = @transform_11, window_bounds = array<i64: 128, 32>}, {pipeline_mode = #tpu.pipeline_mode<synchronous>, transform_indices = @transform_12, window_bounds = array<i64: 1, 32>}, {transform_indices = @transform_13, window_bounds = array<i64: 16, 32>}]} {
    %c0 = arith.constant 0 : index
    %c0_0 = arith.constant 0 : index
    %0 = vector.load %arg1[%c0, %c0_0] : memref<16x32xf32, #tpu.memory_space<vmem>>, vector<16x32xf32>
    %c0_1 = arith.constant 0 : index
    %c0_2 = arith.constant 0 : index
    %1 = vector.load %arg2[%c0_1, %c0_2] : memref<1x32xf32, #tpu.memory_space<vmem>>, vector<1x32xf32>
    %c0_3 = arith.constant 0 : index
    %c0_4 = arith.constant 0 : index
    %2 = vector.load %arg3[%c0_3, %c0_4] : memref<1x32xf32, #tpu.memory_space<vmem>>, vector<1x32xf32>
    %cst = arith.constant dense<0.000000e+00> : vector<16xf32>
    %3 = vector.multi_reduction <add>, %0, %cst [1] : vector<16x32xf32> to vector<16xf32>
    %4 = vector.shape_cast %3 : vector<16xf32> to vector<16x1xf32>
    %cst_5 = arith.constant 3.200000e+01 : f32
    %5 = vector.broadcast %cst_5 : f32 to vector<16x1xf32>
    %6 = arith.divf %4, %5 : vector<16x1xf32>
    %7 = vector.broadcast %6 : vector<16x1xf32> to vector<16x32xf32>
    %8 = arith.subf %0, %7 : vector<16x32xf32>
    %9 = arith.mulf %8, %8 : vector<16x32xf32>
    %cst_6 = arith.constant dense<0.000000e+00> : vector<16xf32>
    %10 = vector.multi_reduction <add>, %9, %cst_6 [1] : vector<16x32xf32> to vector<16xf32>
    %11 = vector.shape_cast %10 : vector<16xf32> to vector<16x1xf32>
    %cst_7 = arith.constant 3.200000e+01 : f32
    %12 = vector.broadcast %cst_7 : f32 to vector<16x1xf32>
    %13 = arith.divf %11, %12 : vector<16x1xf32>
    %14 = vector.broadcast %6 : vector<16x1xf32> to vector<16x32xf32>
    %15 = arith.subf %0, %14 : vector<16x32xf32>
    %cst_8 = arith.constant 9.99999974E-6 : f32
    %16 = vector.broadcast %cst_8 : f32 to vector<16x1xf32>
    %17 = arith.addf %13, %16 : vector<16x1xf32>
    %18 = math.rsqrt %17 : vector<16x1xf32>
    %19 = vector.broadcast %18 : vector<16x1xf32> to vector<16x32xf32>
    %20 = arith.mulf %15, %19 : vector<16x32xf32>
    %21 = vector.broadcast %1 : vector<1x32xf32> to vector<16x32xf32>
    %22 = arith.mulf %20, %21 : vector<16x32xf32>
    %23 = vector.broadcast %2 : vector<1x32xf32> to vector<16x32xf32>
    %24 = arith.addf %22, %23 : vector<16x32xf32>
    %25 = arith.truncf %24 : vector<16x32xf32> to vector<16x32xbf16>
    %c0_9 = arith.constant 0 : index
    %c0_10 = arith.constant 0 : index
    %26 = vector.load %arg4[%c0_9, %c0_10] : memref<32x96xbf16, #tpu.memory_space<vmem>>, vector<32x96xbf16>
    %cst_11 = arith.constant dense<0.000000e+00> : vector<16x96xf32>
    %27 = tpu.matmul %25, %26, %cst_11 {dimension_numbers = #tpu.dot_dimension_numbers<[1], [0], [0], [1], [0, 0, 1, 1], [], []>} : vector<16x32xbf16>, vector<32x96xbf16>, vector<16x96xf32> -> vector<16x96xf32>
    %c0_12 = arith.constant 0 : index
    %c0_13 = arith.constant 0 : index
    %28 = vector.load %arg5[%c0_12, %c0_13] : memref<1x96xf32, #tpu.memory_space<vmem>>, vector<1x96xf32>
    %29 = vector.broadcast %28 : vector<1x96xf32> to vector<16x96xf32>
    %30 = arith.addf %27, %29 : vector<16x96xf32>
    %31 = arith.truncf %30 : vector<16x96xf32> to vector<16x96xbf16>
    %cst_14 = arith.constant 0.000000e+00 : f32
    %32 = vector.broadcast %cst_14 : f32 to vector<16x32xf32>
    %33 = vector.extract_strided_slice %31 {offsets = [0, 0], sizes = [8, 4], strides = [1, 1]} : vector<16x96xbf16> to vector<8x4xbf16>
    %34 = vector.extract_strided_slice %31 {offsets = [0, 32], sizes = [8, 4], strides = [1, 1]} : vector<16x96xbf16> to vector<8x4xbf16>
    %35 = vector.extract_strided_slice %31 {offsets = [0, 64], sizes = [8, 4], strides = [1, 1]} : vector<16x96xbf16> to vector<8x4xbf16>
    %cst_15 = arith.constant dense<0.000000e+00> : vector<8x8xf32>
    %36 = tpu.matmul %33, %34, %cst_15 {dimension_numbers = #tpu.dot_dimension_numbers<[1], [1], [0], [0], [0, 0, 1, 0], [], []>} : vector<8x4xbf16>, vector<8x4xbf16>, vector<8x8xf32> -> vector<8x8xf32>
    %cst_16 = arith.constant dense<0xFF800000> : vector<8xf32>
    %37 = vector.multi_reduction <maximumf>, %36, %cst_16 [1] : vector<8x8xf32> to vector<8xf32>
    %38 = vector.shape_cast %37 : vector<8xf32> to vector<8x1xf32>
    %39 = vector.broadcast %38 : vector<8x1xf32> to vector<8x8xf32>
    %40 = arith.subf %36, %39 : vector<8x8xf32>
    %41 = math.exp %40 : vector<8x8xf32>
    %cst_17 = arith.constant dense<0.000000e+00> : vector<8xf32>
    %42 = vector.multi_reduction <add>, %41, %cst_17 [1] : vector<8x8xf32> to vector<8xf32>
    %43 = vector.shape_cast %42 : vector<8xf32> to vector<8x1xf32>
    %44 = tpu.reciprocal %43 {approx = true} : vector<8x1xf32> -> vector<8x1xf32>
    %45 = arith.truncf %41 : vector<8x8xf32> to vector<8x8xbf16>
    %cst_18 = arith.constant dense<0.000000e+00> : vector<8x4xf32>
    %46 = tpu.matmul %45, %35, %cst_18 {dimension_numbers = #tpu.dot_dimension_numbers<[1], [0], [0], [1], [0, 0, 1, 1], [], []>} : vector<8x8xbf16>, vector<8x4xbf16>, vector<8x4xf32> -> vector<8x4xf32>
    %47 = vector.broadcast %44 : vector<8x1xf32> to vector<8x4xf32>
    %48 = arith.mulf %46, %47 : vector<8x4xf32>
    %49 = vector.extract_strided_slice %31 {offsets = [8, 0], sizes = [8, 4], strides = [1, 1]} : vector<16x96xbf16> to vector<8x4xbf16>
    %50 = vector.extract_strided_slice %31 {offsets = [8, 32], sizes = [8, 4], strides = [1, 1]} : vector<16x96xbf16> to vector<8x4xbf16>
    %51 = vector.extract_strided_slice %31 {offsets = [8, 64], sizes = [8, 4], strides = [1, 1]} : vector<16x96xbf16> to vector<8x4xbf16>
    %cst_19 = arith.constant dense<0.000000e+00> : vector<8x8xf32>
    %52 = tpu.matmul %49, %50, %cst_19 {dimension_numbers = #tpu.dot_dimension_numbers<[1], [1], [0], [0], [0, 0, 1, 0], [], []>} : vector<8x4xbf16>, vector<8x4xbf16>, vector<8x8xf32> -> vector<8x8xf32>
    %cst_20 = arith.constant dense<0xFF800000> : vector<8xf32>
    %53 = vector.multi_reduction <maximumf>, %52, %cst_20 [1] : vector<8x8xf32> to vector<8xf32>
    %54 = vector.shape_cast %53 : vector<8xf32> to vector<8x1xf32>
    %55 = vector.broadcast %54 : vector<8x1xf32> to vector<8x8xf32>
    %56 = arith.subf %52, %55 : vector<8x8xf32>
    %57 = math.exp %56 : vector<8x8xf32>
    %cst_21 = arith.constant dense<0.000000e+00> : vector<8xf32>
    %58 = vector.multi_reduction <add>, %57, %cst_21 [1] : vector<8x8xf32> to vector<8xf32>
    %59 = vector.shape_cast %58 : vector<8xf32> to vector<8x1xf32>
    %60 = tpu.reciprocal %59 {approx = true} : vector<8x1xf32> -> vector<8x1xf32>
    %61 = arith.truncf %57 : vector<8x8xf32> to vector<8x8xbf16>
    %cst_22 = arith.constant dense<0.000000e+00> : vector<8x4xf32>
    %62 = tpu.matmul %61, %51, %cst_22 {dimension_numbers = #tpu.dot_dimension_numbers<[1], [0], [0], [1], [0, 0, 1, 1], [], []>} : vector<8x8xbf16>, vector<8x4xbf16>, vector<8x4xf32> -> vector<8x4xf32>
    %63 = vector.broadcast %60 : vector<8x1xf32> to vector<8x4xf32>
    %64 = arith.mulf %62, %63 : vector<8x4xf32>
    %65 = tpu.concatenate %48, %64 in 0 : vector<8x4xf32>, vector<8x4xf32> -> vector<16x4xf32>
    %66 = arith.truncf %65 : vector<16x4xf32> to vector<16x4xbf16>
    %c0_23 = arith.constant 0 : index
    %c0_24 = arith.constant 0 : index
    %c0_25 = arith.constant 0 : index
    %67 = vector.load %arg6[%c0_23, %c0_24, %c0_25] : memref<8x4x32xbf16, #tpu.memory_space<vmem>>, vector<1x4x32xbf16>
    %68 = vector.shape_cast %67 : vector<1x4x32xbf16> to vector<4x32xbf16>
    %cst_26 = arith.constant dense<0.000000e+00> : vector<16x32xf32>
    %69 = tpu.matmul %66, %68, %cst_26 {dimension_numbers = #tpu.dot_dimension_numbers<[1], [0], [0], [1], [0, 0, 1, 1], [], []>} : vector<16x4xbf16>, vector<4x32xbf16>, vector<16x32xf32> -> vector<16x32xf32>
    %70 = arith.addf %32, %69 : vector<16x32xf32>
    %71 = vector.extract_strided_slice %31 {offsets = [0, 4], sizes = [8, 4], strides = [1, 1]} : vector<16x96xbf16> to vector<8x4xbf16>
    %72 = vector.extract_strided_slice %31 {offsets = [0, 36], sizes = [8, 4], strides = [1, 1]} : vector<16x96xbf16> to vector<8x4xbf16>
    %73 = vector.extract_strided_slice %31 {offsets = [0, 68], sizes = [8, 4], strides = [1, 1]} : vector<16x96xbf16> to vector<8x4xbf16>
    %cst_27 = arith.constant dense<0.000000e+00> : vector<8x8xf32>
    %74 = tpu.matmul %71, %72, %cst_27 {dimension_numbers = #tpu.dot_dimension_numbers<[1], [1], [0], [0], [0, 0, 1, 0], [], []>} : vector<8x4xbf16>, vector<8x4xbf16>, vector<8x8xf32> -> vector<8x8xf32>
    %cst_28 = arith.constant dense<0xFF800000> : vector<8xf32>
    %75 = vector.multi_reduction <maximumf>, %74, %cst_28 [1] : vector<8x8xf32> to vector<8xf32>
    %76 = vector.shape_cast %75 : vector<8xf32> to vector<8x1xf32>
    %77 = vector.broadcast %76 : vector<8x1xf32> to vector<8x8xf32>
    %78 = arith.subf %74, %77 : vector<8x8xf32>
    %79 = math.exp %78 : vector<8x8xf32>
    %cst_29 = arith.constant dense<0.000000e+00> : vector<8xf32>
    %80 = vector.multi_reduction <add>, %79, %cst_29 [1] : vector<8x8xf32> to vector<8xf32>
    %81 = vector.shape_cast %80 : vector<8xf32> to vector<8x1xf32>
    %82 = tpu.reciprocal %81 {approx = true} : vector<8x1xf32> -> vector<8x1xf32>
    %83 = arith.truncf %79 : vector<8x8xf32> to vector<8x8xbf16>
    %cst_30 = arith.constant dense<0.000000e+00> : vector<8x4xf32>
    %84 = tpu.matmul %83, %73, %cst_30 {dimension_numbers = #tpu.dot_dimension_numbers<[1], [0], [0], [1], [0, 0, 1, 1], [], []>} : vector<8x8xbf16>, vector<8x4xbf16>, vector<8x4xf32> -> vector<8x4xf32>
    %85 = vector.broadcast %82 : vector<8x1xf32> to vector<8x4xf32>
    %86 = arith.mulf %84, %85 : vector<8x4xf32>
    %87 = vector.extract_strided_slice %31 {offsets = [8, 4], sizes = [8, 4], strides = [1, 1]} : vector<16x96xbf16> to vector<8x4xbf16>
    %88 = vector.extract_strided_slice %31 {offsets = [8, 36], sizes = [8, 4], strides = [1, 1]} : vector<16x96xbf16> to vector<8x4xbf16>
    %89 = vector.extract_strided_slice %31 {offsets = [8, 68], sizes = [8, 4], strides = [1, 1]} : vector<16x96xbf16> to vector<8x4xbf16>
    %cst_31 = arith.constant dense<0.000000e+00> : vector<8x8xf32>
    %90 = tpu.matmul %87, %88, %cst_31 {dimension_numbers = #tpu.dot_dimension_numbers<[1], [1], [0], [0], [0, 0, 1, 0], [], []>} : vector<8x4xbf16>, vector<8x4xbf16>, vector<8x8xf32> -> vector<8x8xf32>
    %cst_32 = arith.constant dense<0xFF800000> : vector<8xf32>
    %91 = vector.multi_reduction <maximumf>, %90, %cst_32 [1] : vector<8x8xf32> to vector<8xf32>
    %92 = vector.shape_cast %91 : vector<8xf32> to vector<8x1xf32>
    %93 = vector.broadcast %92 : vector<8x1xf32> to vector<8x8xf32>
    %94 = arith.subf %90, %93 : vector<8x8xf32>
    %95 = math.exp %94 : vector<8x8xf32>
    %cst_33 = arith.constant dense<0.000000e+00> : vector<8xf32>
    %96 = vector.multi_reduction <add>, %95, %cst_33 [1] : vector<8x8xf32> to vector<8xf32>
    %97 = vector.shape_cast %96 : vector<8xf32> to vector<8x1xf32>
    %98 = tpu.reciprocal %97 {approx = true} : vector<8x1xf32> -> vector<8x1xf32>
    %99 = arith.truncf %95 : vector<8x8xf32> to vector<8x8xbf16>
    %cst_34 = arith.constant dense<0.000000e+00> : vector<8x4xf32>
    %100 = tpu.matmul %99, %89, %cst_34 {dimension_numbers = #tpu.dot_dimension_numbers<[1], [0], [0], [1], [0, 0, 1, 1], [], []>} : vector<8x8xbf16>, vector<8x4xbf16>, vector<8x4xf32> -> vector<8x4xf32>
    %101 = vector.broadcast %98 : vector<8x1xf32> to vector<8x4xf32>
    %102 = arith.mulf %100, %101 : vector<8x4xf32>
    %103 = tpu.concatenate %86, %102 in 0 : vector<8x4xf32>, vector<8x4xf32> -> vector<16x4xf32>
    %104 = arith.truncf %103 : vector<16x4xf32> to vector<16x4xbf16>
    %c1 = arith.constant 1 : index
    %c0_35 = arith.constant 0 : index
    %c0_36 = arith.constant 0 : index
    %105 = vector.load %arg6[%c1, %c0_35, %c0_36] : memref<8x4x32xbf16, #tpu.memory_space<vmem>>, vector<1x4x32xbf16>
    %106 = vector.shape_cast %105 : vector<1x4x32xbf16> to vector<4x32xbf16>
    %cst_37 = arith.constant dense<0.000000e+00> : vector<16x32xf32>
    %107 = tpu.matmul %104, %106, %cst_37 {dimension_numbers = #tpu.dot_dimension_numbers<[1], [0], [0], [1], [0, 0, 1, 1], [], []>} : vector<16x4xbf16>, vector<4x32xbf16>, vector<16x32xf32> -> vector<16x32xf32>
    %108 = arith.addf %70, %107 : vector<16x32xf32>
    %109 = vector.extract_strided_slice %31 {offsets = [0, 8], sizes = [8, 4], strides = [1, 1]} : vector<16x96xbf16> to vector<8x4xbf16>
    %110 = vector.extract_strided_slice %31 {offsets = [0, 40], sizes = [8, 4], strides = [1, 1]} : vector<16x96xbf16> to vector<8x4xbf16>
    %111 = vector.extract_strided_slice %31 {offsets = [0, 72], sizes = [8, 4], strides = [1, 1]} : vector<16x96xbf16> to vector<8x4xbf16>
    %cst_38 = arith.constant dense<0.000000e+00> : vector<8x8xf32>
    %112 = tpu.matmul %109, %110, %cst_38 {dimension_numbers = #tpu.dot_dimension_numbers<[1], [1], [0], [0], [0, 0, 1, 0], [], []>} : vector<8x4xbf16>, vector<8x4xbf16>, vector<8x8xf32> -> vector<8x8xf32>
    %cst_39 = arith.constant dense<0xFF800000> : vector<8xf32>
    %113 = vector.multi_reduction <maximumf>, %112, %cst_39 [1] : vector<8x8xf32> to vector<8xf32>
    %114 = vector.shape_cast %113 : vector<8xf32> to vector<8x1xf32>
    %115 = vector.broadcast %114 : vector<8x1xf32> to vector<8x8xf32>
    %116 = arith.subf %112, %115 : vector<8x8xf32>
    %117 = math.exp %116 : vector<8x8xf32>
    %cst_40 = arith.constant dense<0.000000e+00> : vector<8xf32>
    %118 = vector.multi_reduction <add>, %117, %cst_40 [1] : vector<8x8xf32> to vector<8xf32>
    %119 = vector.shape_cast %118 : vector<8xf32> to vector<8x1xf32>
    %120 = tpu.reciprocal %119 {approx = true} : vector<8x1xf32> -> vector<8x1xf32>
    %121 = arith.truncf %117 : vector<8x8xf32> to vector<8x8xbf16>
    %cst_41 = arith.constant dense<0.000000e+00> : vector<8x4xf32>
    %122 = tpu.matmul %121, %111, %cst_41 {dimension_numbers = #tpu.dot_dimension_numbers<[1], [0], [0], [1], [0, 0, 1, 1], [], []>} : vector<8x8xbf16>, vector<8x4xbf16>, vector<8x4xf32> -> vector<8x4xf32>
    %123 = vector.broadcast %120 : vector<8x1xf32> to vector<8x4xf32>
    %124 = arith.mulf %122, %123 : vector<8x4xf32>
    %125 = vector.extract_strided_slice %31 {offsets = [8, 8], sizes = [8, 4], strides = [1, 1]} : vector<16x96xbf16> to vector<8x4xbf16>
    %126 = vector.extract_strided_slice %31 {offsets = [8, 40], sizes = [8, 4], strides = [1, 1]} : vector<16x96xbf16> to vector<8x4xbf16>
    %127 = vector.extract_strided_slice %31 {offsets = [8, 72], sizes = [8, 4], strides = [1, 1]} : vector<16x96xbf16> to vector<8x4xbf16>
    %cst_42 = arith.constant dense<0.000000e+00> : vector<8x8xf32>
    %128 = tpu.matmul %125, %126, %cst_42 {dimension_numbers = #tpu.dot_dimension_numbers<[1], [1], [0], [0], [0, 0, 1, 0], [], []>} : vector<8x4xbf16>, vector<8x4xbf16>, vector<8x8xf32> -> vector<8x8xf32>
    %cst_43 = arith.constant dense<0xFF800000> : vector<8xf32>
    %129 = vector.multi_reduction <maximumf>, %128, %cst_43 [1] : vector<8x8xf32> to vector<8xf32>
    %130 = vector.shape_cast %129 : vector<8xf32> to vector<8x1xf32>
    %131 = vector.broadcast %130 : vector<8x1xf32> to vector<8x8xf32>
    %132 = arith.subf %128, %131 : vector<8x8xf32>
    %133 = math.exp %132 : vector<8x8xf32>
    %cst_44 = arith.constant dense<0.000000e+00> : vector<8xf32>
    %134 = vector.multi_reduction <add>, %133, %cst_44 [1] : vector<8x8xf32> to vector<8xf32>
    %135 = vector.shape_cast %134 : vector<8xf32> to vector<8x1xf32>
    %136 = tpu.reciprocal %135 {approx = true} : vector<8x1xf32> -> vector<8x1xf32>
    %137 = arith.truncf %133 : vector<8x8xf32> to vector<8x8xbf16>
    %cst_45 = arith.constant dense<0.000000e+00> : vector<8x4xf32>
    %138 = tpu.matmul %137, %127, %cst_45 {dimension_numbers = #tpu.dot_dimension_numbers<[1], [0], [0], [1], [0, 0, 1, 1], [], []>} : vector<8x8xbf16>, vector<8x4xbf16>, vector<8x4xf32> -> vector<8x4xf32>
    %139 = vector.broadcast %136 : vector<8x1xf32> to vector<8x4xf32>
    %140 = arith.mulf %138, %139 : vector<8x4xf32>
    %141 = tpu.concatenate %124, %140 in 0 : vector<8x4xf32>, vector<8x4xf32> -> vector<16x4xf32>
    %142 = arith.truncf %141 : vector<16x4xf32> to vector<16x4xbf16>
    %c2 = arith.constant 2 : index
    %c0_46 = arith.constant 0 : index
    %c0_47 = arith.constant 0 : index
    %143 = vector.load %arg6[%c2, %c0_46, %c0_47] : memref<8x4x32xbf16, #tpu.memory_space<vmem>>, vector<1x4x32xbf16>
    %144 = vector.shape_cast %143 : vector<1x4x32xbf16> to vector<4x32xbf16>
    %cst_48 = arith.constant dense<0.000000e+00> : vector<16x32xf32>
    %145 = tpu.matmul %142, %144, %cst_48 {dimension_numbers = #tpu.dot_dimension_numbers<[1], [0], [0], [1], [0, 0, 1, 1], [], []>} : vector<16x4xbf16>, vector<4x32xbf16>, vector<16x32xf32> -> vector<16x32xf32>
    %146 = arith.addf %108, %145 : vector<16x32xf32>
    %147 = vector.extract_strided_slice %31 {offsets = [0, 12], sizes = [8, 4], strides = [1, 1]} : vector<16x96xbf16> to vector<8x4xbf16>
    %148 = vector.extract_strided_slice %31 {offsets = [0, 44], sizes = [8, 4], strides = [1, 1]} : vector<16x96xbf16> to vector<8x4xbf16>
    %149 = vector.extract_strided_slice %31 {offsets = [0, 76], sizes = [8, 4], strides = [1, 1]} : vector<16x96xbf16> to vector<8x4xbf16>
    %cst_49 = arith.constant dense<0.000000e+00> : vector<8x8xf32>
    %150 = tpu.matmul %147, %148, %cst_49 {dimension_numbers = #tpu.dot_dimension_numbers<[1], [1], [0], [0], [0, 0, 1, 0], [], []>} : vector<8x4xbf16>, vector<8x4xbf16>, vector<8x8xf32> -> vector<8x8xf32>
    %cst_50 = arith.constant dense<0xFF800000> : vector<8xf32>
    %151 = vector.multi_reduction <maximumf>, %150, %cst_50 [1] : vector<8x8xf32> to vector<8xf32>
    %152 = vector.shape_cast %151 : vector<8xf32> to vector<8x1xf32>
    %153 = vector.broadcast %152 : vector<8x1xf32> to vector<8x8xf32>
    %154 = arith.subf %150, %153 : vector<8x8xf32>
    %155 = math.exp %154 : vector<8x8xf32>
    %cst_51 = arith.constant dense<0.000000e+00> : vector<8xf32>
    %156 = vector.multi_reduction <add>, %155, %cst_51 [1] : vector<8x8xf32> to vector<8xf32>
    %157 = vector.shape_cast %156 : vector<8xf32> to vector<8x1xf32>
    %158 = tpu.reciprocal %157 {approx = true} : vector<8x1xf32> -> vector<8x1xf32>
    %159 = arith.truncf %155 : vector<8x8xf32> to vector<8x8xbf16>
    %cst_52 = arith.constant dense<0.000000e+00> : vector<8x4xf32>
    %160 = tpu.matmul %159, %149, %cst_52 {dimension_numbers = #tpu.dot_dimension_numbers<[1], [0], [0], [1], [0, 0, 1, 1], [], []>} : vector<8x8xbf16>, vector<8x4xbf16>, vector<8x4xf32> -> vector<8x4xf32>
    %161 = vector.broadcast %158 : vector<8x1xf32> to vector<8x4xf32>
    %162 = arith.mulf %160, %161 : vector<8x4xf32>
    %163 = vector.extract_strided_slice %31 {offsets = [8, 12], sizes = [8, 4], strides = [1, 1]} : vector<16x96xbf16> to vector<8x4xbf16>
    %164 = vector.extract_strided_slice %31 {offsets = [8, 44], sizes = [8, 4], strides = [1, 1]} : vector<16x96xbf16> to vector<8x4xbf16>
    %165 = vector.extract_strided_slice %31 {offsets = [8, 76], sizes = [8, 4], strides = [1, 1]} : vector<16x96xbf16> to vector<8x4xbf16>
    %cst_53 = arith.constant dense<0.000000e+00> : vector<8x8xf32>
    %166 = tpu.matmul %163, %164, %cst_53 {dimension_numbers = #tpu.dot_dimension_numbers<[1], [1], [0], [0], [0, 0, 1, 0], [], []>} : vector<8x4xbf16>, vector<8x4xbf16>, vector<8x8xf32> -> vector<8x8xf32>
    %cst_54 = arith.constant dense<0xFF800000> : vector<8xf32>
    %167 = vector.multi_reduction <maximumf>, %166, %cst_54 [1] : vector<8x8xf32> to vector<8xf32>
    %168 = vector.shape_cast %167 : vector<8xf32> to vector<8x1xf32>
    %169 = vector.broadcast %168 : vector<8x1xf32> to vector<8x8xf32>
    %170 = arith.subf %166, %169 : vector<8x8xf32>
    %171 = math.exp %170 : vector<8x8xf32>
    %cst_55 = arith.constant dense<0.000000e+00> : vector<8xf32>
    %172 = vector.multi_reduction <add>, %171, %cst_55 [1] : vector<8x8xf32> to vector<8xf32>
    %173 = vector.shape_cast %172 : vector<8xf32> to vector<8x1xf32>
    %174 = tpu.reciprocal %173 {approx = true} : vector<8x1xf32> -> vector<8x1xf32>
    %175 = arith.truncf %171 : vector<8x8xf32> to vector<8x8xbf16>
    %cst_56 = arith.constant dense<0.000000e+00> : vector<8x4xf32>
    %176 = tpu.matmul %175, %165, %cst_56 {dimension_numbers = #tpu.dot_dimension_numbers<[1], [0], [0], [1], [0, 0, 1, 1], [], []>} : vector<8x8xbf16>, vector<8x4xbf16>, vector<8x4xf32> -> vector<8x4xf32>
    %177 = vector.broadcast %174 : vector<8x1xf32> to vector<8x4xf32>
    %178 = arith.mulf %176, %177 : vector<8x4xf32>
    %179 = tpu.concatenate %162, %178 in 0 : vector<8x4xf32>, vector<8x4xf32> -> vector<16x4xf32>
    %180 = arith.truncf %179 : vector<16x4xf32> to vector<16x4xbf16>
    %c3 = arith.constant 3 : index
    %c0_57 = arith.constant 0 : index
    %c0_58 = arith.constant 0 : index
    %181 = vector.load %arg6[%c3, %c0_57, %c0_58] : memref<8x4x32xbf16, #tpu.memory_space<vmem>>, vector<1x4x32xbf16>
    %182 = vector.shape_cast %181 : vector<1x4x32xbf16> to vector<4x32xbf16>
    %cst_59 = arith.constant dense<0.000000e+00> : vector<16x32xf32>
    %183 = tpu.matmul %180, %182, %cst_59 {dimension_numbers = #tpu.dot_dimension_numbers<[1], [0], [0], [1], [0, 0, 1, 1], [], []>} : vector<16x4xbf16>, vector<4x32xbf16>, vector<16x32xf32> -> vector<16x32xf32>
    %184 = arith.addf %146, %183 : vector<16x32xf32>
    %185 = vector.extract_strided_slice %31 {offsets = [0, 16], sizes = [8, 4], strides = [1, 1]} : vector<16x96xbf16> to vector<8x4xbf16>
    %186 = vector.extract_strided_slice %31 {offsets = [0, 48], sizes = [8, 4], strides = [1, 1]} : vector<16x96xbf16> to vector<8x4xbf16>
    %187 = vector.extract_strided_slice %31 {offsets = [0, 80], sizes = [8, 4], strides = [1, 1]} : vector<16x96xbf16> to vector<8x4xbf16>
    %cst_60 = arith.constant dense<0.000000e+00> : vector<8x8xf32>
    %188 = tpu.matmul %185, %186, %cst_60 {dimension_numbers = #tpu.dot_dimension_numbers<[1], [1], [0], [0], [0, 0, 1, 0], [], []>} : vector<8x4xbf16>, vector<8x4xbf16>, vector<8x8xf32> -> vector<8x8xf32>
    %cst_61 = arith.constant dense<0xFF800000> : vector<8xf32>
    %189 = vector.multi_reduction <maximumf>, %188, %cst_61 [1] : vector<8x8xf32> to vector<8xf32>
    %190 = vector.shape_cast %189 : vector<8xf32> to vector<8x1xf32>
    %191 = vector.broadcast %190 : vector<8x1xf32> to vector<8x8xf32>
    %192 = arith.subf %188, %191 : vector<8x8xf32>
    %193 = math.exp %192 : vector<8x8xf32>
    %cst_62 = arith.constant dense<0.000000e+00> : vector<8xf32>
    %194 = vector.multi_reduction <add>, %193, %cst_62 [1] : vector<8x8xf32> to vector<8xf32>
    %195 = vector.shape_cast %194 : vector<8xf32> to vector<8x1xf32>
    %196 = tpu.reciprocal %195 {approx = true} : vector<8x1xf32> -> vector<8x1xf32>
    %197 = arith.truncf %193 : vector<8x8xf32> to vector<8x8xbf16>
    %cst_63 = arith.constant dense<0.000000e+00> : vector<8x4xf32>
    %198 = tpu.matmul %197, %187, %cst_63 {dimension_numbers = #tpu.dot_dimension_numbers<[1], [0], [0], [1], [0, 0, 1, 1], [], []>} : vector<8x8xbf16>, vector<8x4xbf16>, vector<8x4xf32> -> vector<8x4xf32>
    %199 = vector.broadcast %196 : vector<8x1xf32> to vector<8x4xf32>
    %200 = arith.mulf %198, %199 : vector<8x4xf32>
    %201 = vector.extract_strided_slice %31 {offsets = [8, 16], sizes = [8, 4], strides = [1, 1]} : vector<16x96xbf16> to vector<8x4xbf16>
    %202 = vector.extract_strided_slice %31 {offsets = [8, 48], sizes = [8, 4], strides = [1, 1]} : vector<16x96xbf16> to vector<8x4xbf16>
    %203 = vector.extract_strided_slice %31 {offsets = [8, 80], sizes = [8, 4], strides = [1, 1]} : vector<16x96xbf16> to vector<8x4xbf16>
    %cst_64 = arith.constant dense<0.000000e+00> : vector<8x8xf32>
    %204 = tpu.matmul %201, %202, %cst_64 {dimension_numbers = #tpu.dot_dimension_numbers<[1], [1], [0], [0], [0, 0, 1, 0], [], []>} : vector<8x4xbf16>, vector<8x4xbf16>, vector<8x8xf32> -> vector<8x8xf32>
    %cst_65 = arith.constant dense<0xFF800000> : vector<8xf32>
    %205 = vector.multi_reduction <maximumf>, %204, %cst_65 [1] : vector<8x8xf32> to vector<8xf32>
    %206 = vector.shape_cast %205 : vector<8xf32> to vector<8x1xf32>
    %207 = vector.broadcast %206 : vector<8x1xf32> to vector<8x8xf32>
    %208 = arith.subf %204, %207 : vector<8x8xf32>
    %209 = math.exp %208 : vector<8x8xf32>
    %cst_66 = arith.constant dense<0.000000e+00> : vector<8xf32>
    %210 = vector.multi_reduction <add>, %209, %cst_66 [1] : vector<8x8xf32> to vector<8xf32>
    %211 = vector.shape_cast %210 : vector<8xf32> to vector<8x1xf32>
    %212 = tpu.reciprocal %211 {approx = true} : vector<8x1xf32> -> vector<8x1xf32>
    %213 = arith.truncf %209 : vector<8x8xf32> to vector<8x8xbf16>
    %cst_67 = arith.constant dense<0.000000e+00> : vector<8x4xf32>
    %214 = tpu.matmul %213, %203, %cst_67 {dimension_numbers = #tpu.dot_dimension_numbers<[1], [0], [0], [1], [0, 0, 1, 1], [], []>} : vector<8x8xbf16>, vector<8x4xbf16>, vector<8x4xf32> -> vector<8x4xf32>
    %215 = vector.broadcast %212 : vector<8x1xf32> to vector<8x4xf32>
    %216 = arith.mulf %214, %215 : vector<8x4xf32>
    %217 = tpu.concatenate %200, %216 in 0 : vector<8x4xf32>, vector<8x4xf32> -> vector<16x4xf32>
    %218 = arith.truncf %217 : vector<16x4xf32> to vector<16x4xbf16>
    %c4 = arith.constant 4 : index
    %c0_68 = arith.constant 0 : index
    %c0_69 = arith.constant 0 : index
    %219 = vector.load %arg6[%c4, %c0_68, %c0_69] : memref<8x4x32xbf16, #tpu.memory_space<vmem>>, vector<1x4x32xbf16>
    %220 = vector.shape_cast %219 : vector<1x4x32xbf16> to vector<4x32xbf16>
    %cst_70 = arith.constant dense<0.000000e+00> : vector<16x32xf32>
    %221 = tpu.matmul %218, %220, %cst_70 {dimension_numbers = #tpu.dot_dimension_numbers<[1], [0], [0], [1], [0, 0, 1, 1], [], []>} : vector<16x4xbf16>, vector<4x32xbf16>, vector<16x32xf32> -> vector<16x32xf32>
    %222 = arith.addf %184, %221 : vector<16x32xf32>
    %223 = vector.extract_strided_slice %31 {offsets = [0, 20], sizes = [8, 4], strides = [1, 1]} : vector<16x96xbf16> to vector<8x4xbf16>
    %224 = vector.extract_strided_slice %31 {offsets = [0, 52], sizes = [8, 4], strides = [1, 1]} : vector<16x96xbf16> to vector<8x4xbf16>
    %225 = vector.extract_strided_slice %31 {offsets = [0, 84], sizes = [8, 4], strides = [1, 1]} : vector<16x96xbf16> to vector<8x4xbf16>
    %cst_71 = arith.constant dense<0.000000e+00> : vector<8x8xf32>
    %226 = tpu.matmul %223, %224, %cst_71 {dimension_numbers = #tpu.dot_dimension_numbers<[1], [1], [0], [0], [0, 0, 1, 0], [], []>} : vector<8x4xbf16>, vector<8x4xbf16>, vector<8x8xf32> -> vector<8x8xf32>
    %cst_72 = arith.constant dense<0xFF800000> : vector<8xf32>
    %227 = vector.multi_reduction <maximumf>, %226, %cst_72 [1] : vector<8x8xf32> to vector<8xf32>
    %228 = vector.shape_cast %227 : vector<8xf32> to vector<8x1xf32>
    %229 = vector.broadcast %228 : vector<8x1xf32> to vector<8x8xf32>
    %230 = arith.subf %226, %229 : vector<8x8xf32>
    %231 = math.exp %230 : vector<8x8xf32>
    %cst_73 = arith.constant dense<0.000000e+00> : vector<8xf32>
    %232 = vector.multi_reduction <add>, %231, %cst_73 [1] : vector<8x8xf32> to vector<8xf32>
    %233 = vector.shape_cast %232 : vector<8xf32> to vector<8x1xf32>
    %234 = tpu.reciprocal %233 {approx = true} : vector<8x1xf32> -> vector<8x1xf32>
    %235 = arith.truncf %231 : vector<8x8xf32> to vector<8x8xbf16>
    %cst_74 = arith.constant dense<0.000000e+00> : vector<8x4xf32>
    %236 = tpu.matmul %235, %225, %cst_74 {dimension_numbers = #tpu.dot_dimension_numbers<[1], [0], [0], [1], [0, 0, 1, 1], [], []>} : vector<8x8xbf16>, vector<8x4xbf16>, vector<8x4xf32> -> vector<8x4xf32>
    %237 = vector.broadcast %234 : vector<8x1xf32> to vector<8x4xf32>
    %238 = arith.mulf %236, %237 : vector<8x4xf32>
    %239 = vector.extract_strided_slice %31 {offsets = [8, 20], sizes = [8, 4], strides = [1, 1]} : vector<16x96xbf16> to vector<8x4xbf16>
    %240 = vector.extract_strided_slice %31 {offsets = [8, 52], sizes = [8, 4], strides = [1, 1]} : vector<16x96xbf16> to vector<8x4xbf16>
    %241 = vector.extract_strided_slice %31 {offsets = [8, 84], sizes = [8, 4], strides = [1, 1]} : vector<16x96xbf16> to vector<8x4xbf16>
    %cst_75 = arith.constant dense<0.000000e+00> : vector<8x8xf32>
    %242 = tpu.matmul %239, %240, %cst_75 {dimension_numbers = #tpu.dot_dimension_numbers<[1], [1], [0], [0], [0, 0, 1, 0], [], []>} : vector<8x4xbf16>, vector<8x4xbf16>, vector<8x8xf32> -> vector<8x8xf32>
    %cst_76 = arith.constant dense<0xFF800000> : vector<8xf32>
    %243 = vector.multi_reduction <maximumf>, %242, %cst_76 [1] : vector<8x8xf32> to vector<8xf32>
    %244 = vector.shape_cast %243 : vector<8xf32> to vector<8x1xf32>
    %245 = vector.broadcast %244 : vector<8x1xf32> to vector<8x8xf32>
    %246 = arith.subf %242, %245 : vector<8x8xf32>
    %247 = math.exp %246 : vector<8x8xf32>
    %cst_77 = arith.constant dense<0.000000e+00> : vector<8xf32>
    %248 = vector.multi_reduction <add>, %247, %cst_77 [1] : vector<8x8xf32> to vector<8xf32>
    %249 = vector.shape_cast %248 : vector<8xf32> to vector<8x1xf32>
    %250 = tpu.reciprocal %249 {approx = true} : vector<8x1xf32> -> vector<8x1xf32>
    %251 = arith.truncf %247 : vector<8x8xf32> to vector<8x8xbf16>
    %cst_78 = arith.constant dense<0.000000e+00> : vector<8x4xf32>
    %252 = tpu.matmul %251, %241, %cst_78 {dimension_numbers = #tpu.dot_dimension_numbers<[1], [0], [0], [1], [0, 0, 1, 1], [], []>} : vector<8x8xbf16>, vector<8x4xbf16>, vector<8x4xf32> -> vector<8x4xf32>
    %253 = vector.broadcast %250 : vector<8x1xf32> to vector<8x4xf32>
    %254 = arith.mulf %252, %253 : vector<8x4xf32>
    %255 = tpu.concatenate %238, %254 in 0 : vector<8x4xf32>, vector<8x4xf32> -> vector<16x4xf32>
    %256 = arith.truncf %255 : vector<16x4xf32> to vector<16x4xbf16>
    %c5 = arith.constant 5 : index
    %c0_79 = arith.constant 0 : index
    %c0_80 = arith.constant 0 : index
    %257 = vector.load %arg6[%c5, %c0_79, %c0_80] : memref<8x4x32xbf16, #tpu.memory_space<vmem>>, vector<1x4x32xbf16>
    %258 = vector.shape_cast %257 : vector<1x4x32xbf16> to vector<4x32xbf16>
    %cst_81 = arith.constant dense<0.000000e+00> : vector<16x32xf32>
    %259 = tpu.matmul %256, %258, %cst_81 {dimension_numbers = #tpu.dot_dimension_numbers<[1], [0], [0], [1], [0, 0, 1, 1], [], []>} : vector<16x4xbf16>, vector<4x32xbf16>, vector<16x32xf32> -> vector<16x32xf32>
    %260 = arith.addf %222, %259 : vector<16x32xf32>
    %261 = vector.extract_strided_slice %31 {offsets = [0, 24], sizes = [8, 4], strides = [1, 1]} : vector<16x96xbf16> to vector<8x4xbf16>
    %262 = vector.extract_strided_slice %31 {offsets = [0, 56], sizes = [8, 4], strides = [1, 1]} : vector<16x96xbf16> to vector<8x4xbf16>
    %263 = vector.extract_strided_slice %31 {offsets = [0, 88], sizes = [8, 4], strides = [1, 1]} : vector<16x96xbf16> to vector<8x4xbf16>
    %cst_82 = arith.constant dense<0.000000e+00> : vector<8x8xf32>
    %264 = tpu.matmul %261, %262, %cst_82 {dimension_numbers = #tpu.dot_dimension_numbers<[1], [1], [0], [0], [0, 0, 1, 0], [], []>} : vector<8x4xbf16>, vector<8x4xbf16>, vector<8x8xf32> -> vector<8x8xf32>
    %cst_83 = arith.constant dense<0xFF800000> : vector<8xf32>
    %265 = vector.multi_reduction <maximumf>, %264, %cst_83 [1] : vector<8x8xf32> to vector<8xf32>
    %266 = vector.shape_cast %265 : vector<8xf32> to vector<8x1xf32>
    %267 = vector.broadcast %266 : vector<8x1xf32> to vector<8x8xf32>
    %268 = arith.subf %264, %267 : vector<8x8xf32>
    %269 = math.exp %268 : vector<8x8xf32>
    %cst_84 = arith.constant dense<0.000000e+00> : vector<8xf32>
    %270 = vector.multi_reduction <add>, %269, %cst_84 [1] : vector<8x8xf32> to vector<8xf32>
    %271 = vector.shape_cast %270 : vector<8xf32> to vector<8x1xf32>
    %272 = tpu.reciprocal %271 {approx = true} : vector<8x1xf32> -> vector<8x1xf32>
    %273 = arith.truncf %269 : vector<8x8xf32> to vector<8x8xbf16>
    %cst_85 = arith.constant dense<0.000000e+00> : vector<8x4xf32>
    %274 = tpu.matmul %273, %263, %cst_85 {dimension_numbers = #tpu.dot_dimension_numbers<[1], [0], [0], [1], [0, 0, 1, 1], [], []>} : vector<8x8xbf16>, vector<8x4xbf16>, vector<8x4xf32> -> vector<8x4xf32>
    %275 = vector.broadcast %272 : vector<8x1xf32> to vector<8x4xf32>
    %276 = arith.mulf %274, %275 : vector<8x4xf32>
    %277 = vector.extract_strided_slice %31 {offsets = [8, 24], sizes = [8, 4], strides = [1, 1]} : vector<16x96xbf16> to vector<8x4xbf16>
    %278 = vector.extract_strided_slice %31 {offsets = [8, 56], sizes = [8, 4], strides = [1, 1]} : vector<16x96xbf16> to vector<8x4xbf16>
    %279 = vector.extract_strided_slice %31 {offsets = [8, 88], sizes = [8, 4], strides = [1, 1]} : vector<16x96xbf16> to vector<8x4xbf16>
    %cst_86 = arith.constant dense<0.000000e+00> : vector<8x8xf32>
    %280 = tpu.matmul %277, %278, %cst_86 {dimension_numbers = #tpu.dot_dimension_numbers<[1], [1], [0], [0], [0, 0, 1, 0], [], []>} : vector<8x4xbf16>, vector<8x4xbf16>, vector<8x8xf32> -> vector<8x8xf32>
    %cst_87 = arith.constant dense<0xFF800000> : vector<8xf32>
    %281 = vector.multi_reduction <maximumf>, %280, %cst_87 [1] : vector<8x8xf32> to vector<8xf32>
    %282 = vector.shape_cast %281 : vector<8xf32> to vector<8x1xf32>
    %283 = vector.broadcast %282 : vector<8x1xf32> to vector<8x8xf32>
    %284 = arith.subf %280, %283 : vector<8x8xf32>
    %285 = math.exp %284 : vector<8x8xf32>
    %cst_88 = arith.constant dense<0.000000e+00> : vector<8xf32>
    %286 = vector.multi_reduction <add>, %285, %cst_88 [1] : vector<8x8xf32> to vector<8xf32>
    %287 = vector.shape_cast %286 : vector<8xf32> to vector<8x1xf32>
    %288 = tpu.reciprocal %287 {approx = true} : vector<8x1xf32> -> vector<8x1xf32>
    %289 = arith.truncf %285 : vector<8x8xf32> to vector<8x8xbf16>
    %cst_89 = arith.constant dense<0.000000e+00> : vector<8x4xf32>
    %290 = tpu.matmul %289, %279, %cst_89 {dimension_numbers = #tpu.dot_dimension_numbers<[1], [0], [0], [1], [0, 0, 1, 1], [], []>} : vector<8x8xbf16>, vector<8x4xbf16>, vector<8x4xf32> -> vector<8x4xf32>
    %291 = vector.broadcast %288 : vector<8x1xf32> to vector<8x4xf32>
    %292 = arith.mulf %290, %291 : vector<8x4xf32>
    %293 = tpu.concatenate %276, %292 in 0 : vector<8x4xf32>, vector<8x4xf32> -> vector<16x4xf32>
    %294 = arith.truncf %293 : vector<16x4xf32> to vector<16x4xbf16>
    %c6 = arith.constant 6 : index
    %c0_90 = arith.constant 0 : index
    %c0_91 = arith.constant 0 : index
    %295 = vector.load %arg6[%c6, %c0_90, %c0_91] : memref<8x4x32xbf16, #tpu.memory_space<vmem>>, vector<1x4x32xbf16>
    %296 = vector.shape_cast %295 : vector<1x4x32xbf16> to vector<4x32xbf16>
    %cst_92 = arith.constant dense<0.000000e+00> : vector<16x32xf32>
    %297 = tpu.matmul %294, %296, %cst_92 {dimension_numbers = #tpu.dot_dimension_numbers<[1], [0], [0], [1], [0, 0, 1, 1], [], []>} : vector<16x4xbf16>, vector<4x32xbf16>, vector<16x32xf32> -> vector<16x32xf32>
    %298 = arith.addf %260, %297 : vector<16x32xf32>
    %299 = vector.extract_strided_slice %31 {offsets = [0, 28], sizes = [8, 4], strides = [1, 1]} : vector<16x96xbf16> to vector<8x4xbf16>
    %300 = vector.extract_strided_slice %31 {offsets = [0, 60], sizes = [8, 4], strides = [1, 1]} : vector<16x96xbf16> to vector<8x4xbf16>
    %301 = vector.extract_strided_slice %31 {offsets = [0, 92], sizes = [8, 4], strides = [1, 1]} : vector<16x96xbf16> to vector<8x4xbf16>
    %cst_93 = arith.constant dense<0.000000e+00> : vector<8x8xf32>
    %302 = tpu.matmul %299, %300, %cst_93 {dimension_numbers = #tpu.dot_dimension_numbers<[1], [1], [0], [0], [0, 0, 1, 0], [], []>} : vector<8x4xbf16>, vector<8x4xbf16>, vector<8x8xf32> -> vector<8x8xf32>
    %cst_94 = arith.constant dense<0xFF800000> : vector<8xf32>
    %303 = vector.multi_reduction <maximumf>, %302, %cst_94 [1] : vector<8x8xf32> to vector<8xf32>
    %304 = vector.shape_cast %303 : vector<8xf32> to vector<8x1xf32>
    %305 = vector.broadcast %304 : vector<8x1xf32> to vector<8x8xf32>
    %306 = arith.subf %302, %305 : vector<8x8xf32>
    %307 = math.exp %306 : vector<8x8xf32>
    %cst_95 = arith.constant dense<0.000000e+00> : vector<8xf32>
    %308 = vector.multi_reduction <add>, %307, %cst_95 [1] : vector<8x8xf32> to vector<8xf32>
    %309 = vector.shape_cast %308 : vector<8xf32> to vector<8x1xf32>
    %310 = tpu.reciprocal %309 {approx = true} : vector<8x1xf32> -> vector<8x1xf32>
    %311 = arith.truncf %307 : vector<8x8xf32> to vector<8x8xbf16>
    %cst_96 = arith.constant dense<0.000000e+00> : vector<8x4xf32>
    %312 = tpu.matmul %311, %301, %cst_96 {dimension_numbers = #tpu.dot_dimension_numbers<[1], [0], [0], [1], [0, 0, 1, 1], [], []>} : vector<8x8xbf16>, vector<8x4xbf16>, vector<8x4xf32> -> vector<8x4xf32>
    %313 = vector.broadcast %310 : vector<8x1xf32> to vector<8x4xf32>
    %314 = arith.mulf %312, %313 : vector<8x4xf32>
    %315 = vector.extract_strided_slice %31 {offsets = [8, 28], sizes = [8, 4], strides = [1, 1]} : vector<16x96xbf16> to vector<8x4xbf16>
    %316 = vector.extract_strided_slice %31 {offsets = [8, 60], sizes = [8, 4], strides = [1, 1]} : vector<16x96xbf16> to vector<8x4xbf16>
    %317 = vector.extract_strided_slice %31 {offsets = [8, 92], sizes = [8, 4], strides = [1, 1]} : vector<16x96xbf16> to vector<8x4xbf16>
    %cst_97 = arith.constant dense<0.000000e+00> : vector<8x8xf32>
    %318 = tpu.matmul %315, %316, %cst_97 {dimension_numbers = #tpu.dot_dimension_numbers<[1], [1], [0], [0], [0, 0, 1, 0], [], []>} : vector<8x4xbf16>, vector<8x4xbf16>, vector<8x8xf32> -> vector<8x8xf32>
    %cst_98 = arith.constant dense<0xFF800000> : vector<8xf32>
    %319 = vector.multi_reduction <maximumf>, %318, %cst_98 [1] : vector<8x8xf32> to vector<8xf32>
    %320 = vector.shape_cast %319 : vector<8xf32> to vector<8x1xf32>
    %321 = vector.broadcast %320 : vector<8x1xf32> to vector<8x8xf32>
    %322 = arith.subf %318, %321 : vector<8x8xf32>
    %323 = math.exp %322 : vector<8x8xf32>
    %cst_99 = arith.constant dense<0.000000e+00> : vector<8xf32>
    %324 = vector.multi_reduction <add>, %323, %cst_99 [1] : vector<8x8xf32> to vector<8xf32>
    %325 = vector.shape_cast %324 : vector<8xf32> to vector<8x1xf32>
    %326 = tpu.reciprocal %325 {approx = true} : vector<8x1xf32> -> vector<8x1xf32>
    %327 = arith.truncf %323 : vector<8x8xf32> to vector<8x8xbf16>
    %cst_100 = arith.constant dense<0.000000e+00> : vector<8x4xf32>
    %328 = tpu.matmul %327, %317, %cst_100 {dimension_numbers = #tpu.dot_dimension_numbers<[1], [0], [0], [1], [0, 0, 1, 1], [], []>} : vector<8x8xbf16>, vector<8x4xbf16>, vector<8x4xf32> -> vector<8x4xf32>
    %329 = vector.broadcast %326 : vector<8x1xf32> to vector<8x4xf32>
    %330 = arith.mulf %328, %329 : vector<8x4xf32>
    %331 = tpu.concatenate %314, %330 in 0 : vector<8x4xf32>, vector<8x4xf32> -> vector<16x4xf32>
    %332 = arith.truncf %331 : vector<16x4xf32> to vector<16x4xbf16>
    %c7 = arith.constant 7 : index
    %c0_101 = arith.constant 0 : index
    %c0_102 = arith.constant 0 : index
    %333 = vector.load %arg6[%c7, %c0_101, %c0_102] : memref<8x4x32xbf16, #tpu.memory_space<vmem>>, vector<1x4x32xbf16>
    %334 = vector.shape_cast %333 : vector<1x4x32xbf16> to vector<4x32xbf16>
    %cst_103 = arith.constant dense<0.000000e+00> : vector<16x32xf32>
    %335 = tpu.matmul %332, %334, %cst_103 {dimension_numbers = #tpu.dot_dimension_numbers<[1], [0], [0], [1], [0, 0, 1, 1], [], []>} : vector<16x4xbf16>, vector<4x32xbf16>, vector<16x32xf32> -> vector<16x32xf32>
    %336 = arith.addf %298, %335 : vector<16x32xf32>
    %337 = arith.addf %0, %336 : vector<16x32xf32>
    %c0_104 = arith.constant 0 : index
    %c0_105 = arith.constant 0 : index
    %338 = vector.load %arg7[%c0_104, %c0_105] : memref<1x32xf32, #tpu.memory_space<vmem>>, vector<1x32xf32>
    %339 = vector.broadcast %338 : vector<1x32xf32> to vector<16x32xf32>
    %340 = arith.addf %337, %339 : vector<16x32xf32>
    %c0_106 = arith.constant 0 : index
    %c0_107 = arith.constant 0 : index
    %341 = vector.load %arg8[%c0_106, %c0_107] : memref<1x32xf32, #tpu.memory_space<vmem>>, vector<1x32xf32>
    %c0_108 = arith.constant 0 : index
    %c0_109 = arith.constant 0 : index
    %342 = vector.load %arg9[%c0_108, %c0_109] : memref<1x32xf32, #tpu.memory_space<vmem>>, vector<1x32xf32>
    %cst_110 = arith.constant dense<0.000000e+00> : vector<16xf32>
    %343 = vector.multi_reduction <add>, %340, %cst_110 [1] : vector<16x32xf32> to vector<16xf32>
    %344 = vector.shape_cast %343 : vector<16xf32> to vector<16x1xf32>
    %cst_111 = arith.constant 3.200000e+01 : f32
    %345 = vector.broadcast %cst_111 : f32 to vector<16x1xf32>
    %346 = arith.divf %344, %345 : vector<16x1xf32>
    %347 = vector.broadcast %346 : vector<16x1xf32> to vector<16x32xf32>
    %348 = arith.subf %340, %347 : vector<16x32xf32>
    %349 = arith.mulf %348, %348 : vector<16x32xf32>
    %cst_112 = arith.constant dense<0.000000e+00> : vector<16xf32>
    %350 = vector.multi_reduction <add>, %349, %cst_112 [1] : vector<16x32xf32> to vector<16xf32>
    %351 = vector.shape_cast %350 : vector<16xf32> to vector<16x1xf32>
    %cst_113 = arith.constant 3.200000e+01 : f32
    %352 = vector.broadcast %cst_113 : f32 to vector<16x1xf32>
    %353 = arith.divf %351, %352 : vector<16x1xf32>
    %354 = vector.broadcast %346 : vector<16x1xf32> to vector<16x32xf32>
    %355 = arith.subf %340, %354 : vector<16x32xf32>
    %cst_114 = arith.constant 9.99999974E-6 : f32
    %356 = vector.broadcast %cst_114 : f32 to vector<16x1xf32>
    %357 = arith.addf %353, %356 : vector<16x1xf32>
    %358 = math.rsqrt %357 : vector<16x1xf32>
    %359 = vector.broadcast %358 : vector<16x1xf32> to vector<16x32xf32>
    %360 = arith.mulf %355, %359 : vector<16x32xf32>
    %361 = vector.broadcast %341 : vector<1x32xf32> to vector<16x32xf32>
    %362 = arith.mulf %360, %361 : vector<16x32xf32>
    %363 = vector.broadcast %342 : vector<1x32xf32> to vector<16x32xf32>
    %364 = arith.addf %362, %363 : vector<16x32xf32>
    %365 = arith.truncf %364 : vector<16x32xf32> to vector<16x32xbf16>
    %c0_115 = arith.constant 0 : index
    %c0_116 = arith.constant 0 : index
    %366 = vector.load %arg10[%c0_115, %c0_116] : memref<32x128xbf16, #tpu.memory_space<vmem>>, vector<32x128xbf16>
    %cst_117 = arith.constant dense<0.000000e+00> : vector<16x128xf32>
    %367 = tpu.matmul %365, %366, %cst_117 {dimension_numbers = #tpu.dot_dimension_numbers<[1], [0], [0], [1], [0, 0, 1, 1], [], []>} : vector<16x32xbf16>, vector<32x128xbf16>, vector<16x128xf32> -> vector<16x128xf32>
    %c0_118 = arith.constant 0 : index
    %c0_119 = arith.constant 0 : index
    %368 = vector.load %arg11[%c0_118, %c0_119] : memref<1x128xf32, #tpu.memory_space<vmem>>, vector<1x128xf32>
    %369 = vector.broadcast %368 : vector<1x128xf32> to vector<16x128xf32>
    %370 = arith.addf %367, %369 : vector<16x128xf32>
    %cst_120 = arith.constant 1.702000e+00 : f32
    %371 = vector.broadcast %cst_120 : f32 to vector<16x128xf32>
    %372 = arith.mulf %371, %370 : vector<16x128xf32>
    %373 = arith.negf %372 : vector<16x128xf32>
    %374 = math.exp %373 : vector<16x128xf32>
    %cst_121 = arith.constant 1.000000e+00 : f32
    %375 = vector.broadcast %cst_121 : f32 to vector<16x128xf32>
    %376 = arith.addf %375, %374 : vector<16x128xf32>
    %377 = arith.divf %375, %376 : vector<16x128xf32>
    %378 = arith.mulf %370, %377 : vector<16x128xf32>
    %379 = arith.truncf %378 : vector<16x128xf32> to vector<16x128xbf16>
    %c0_122 = arith.constant 0 : index
    %c0_123 = arith.constant 0 : index
    %380 = vector.load %arg12[%c0_122, %c0_123] : memref<128x32xbf16, #tpu.memory_space<vmem>>, vector<128x32xbf16>
    %cst_124 = arith.constant dense<0.000000e+00> : vector<16x32xf32>
    %381 = tpu.matmul %379, %380, %cst_124 {dimension_numbers = #tpu.dot_dimension_numbers<[1], [0], [0], [1], [0, 0, 1, 1], [], []>} : vector<16x128xbf16>, vector<128x32xbf16>, vector<16x32xf32> -> vector<16x32xf32>
    %c0_125 = arith.constant 0 : index
    %c0_126 = arith.constant 0 : index
    %382 = vector.load %arg13[%c0_125, %c0_126] : memref<1x32xf32, #tpu.memory_space<vmem>>, vector<1x32xf32>
    %383 = vector.broadcast %382 : vector<1x32xf32> to vector<16x32xf32>
    %384 = arith.addf %381, %383 : vector<16x32xf32>
    %385 = arith.addf %340, %384 : vector<16x32xf32>
    %c0_127 = arith.constant 0 : index
    %c0_128 = arith.constant 0 : index
    %386 = vector.load %arg14[%c0_127, %c0_128] : memref<16x32xf32, #tpu.memory_space<vmem>>, vector<16x32xf32>
    tpu.vector_store %arg14[%c0_127, %c0_128], %385 {strides = array<i32>} : memref<16x32xf32, #tpu.memory_space<vmem>>, vector<16x32xf32>,
    return
  }
  func.func @transform_0(%arg0: i32) -> (i32, i32) {
    %c0_i32 = arith.constant 0 : i32
    %c0_i32_0 = arith.constant 0 : i32
    return %arg0, %c0_i32 : i32, i32
  }
  func.func @transform_1(%arg0: i32) -> (i32, i32) {
    %c0_i32 = arith.constant 0 : i32
    %c0_i32_0 = arith.constant 0 : i32
    %c0_i32_1 = arith.constant 0 : i32
    return %c0_i32, %c0_i32_0 : i32, i32
  }
  func.func @transform_2(%arg0: i32) -> (i32, i32) {
    %c0_i32 = arith.constant 0 : i32
    %c0_i32_0 = arith.constant 0 : i32
    %c0_i32_1 = arith.constant 0 : i32
    return %c0_i32, %c0_i32_0 : i32, i32
  }
  func.func @transform_3(%arg0: i32) -> (i32, i32) {
    %c0_i32 = arith.constant 0 : i32
    %c0_i32_0 = arith.constant 0 : i32
    %c0_i32_1 = arith.constant 0 : i32
    return %c0_i32, %c0_i32_0 : i32, i32
  }
  func.func @transform_4(%arg0: i32) -> (i32, i32) {
    %c0_i32 = arith.constant 0 : i32
    %c0_i32_0 = arith.constant 0 : i32
    %c0_i32_1 = arith.constant 0 : i32
    return %c0_i32, %c0_i32_0 : i32, i32
  }
  func.func @transform_5(%arg0: i32) -> (i32, i32, i32) {
    %c0_i32 = arith.constant 0 : i32
    %c0_i32_0 = arith.constant 0 : i32
    %c0_i32_1 = arith.constant 0 : i32
    %c0_i32_2 = arith.constant 0 : i32
    return %c0_i32, %c0_i32_0, %c0_i32_1 : i32, i32, i32
  }
  func.func @transform_6(%arg0: i32) -> (i32, i32) {
    %c0_i32 = arith.constant 0 : i32
    %c0_i32_0 = arith.constant 0 : i32
    %c0_i32_1 = arith.constant 0 : i32
    return %c0_i32, %c0_i32_0 : i32, i32
  }
  func.func @transform_7(%arg0: i32) -> (i32, i32) {
    %c0_i32 = arith.constant 0 : i32
    %c0_i32_0 = arith.constant 0 : i32
    %c0_i32_1 = arith.constant 0 : i32
    return %c0_i32, %c0_i32_0 : i32, i32
  }
  func.func @transform_8(%arg0: i32) -> (i32, i32) {
    %c0_i32 = arith.constant 0 : i32
    %c0_i32_0 = arith.constant 0 : i32
    %c0_i32_1 = arith.constant 0 : i32
    return %c0_i32, %c0_i32_0 : i32, i32
  }
  func.func @transform_9(%arg0: i32) -> (i32, i32) {
    %c0_i32 = arith.constant 0 : i32
    %c0_i32_0 = arith.constant 0 : i32
    %c0_i32_1 = arith.constant 0 : i32
    return %c0_i32, %c0_i32_0 : i32, i32
  }
  func.func @transform_10(%arg0: i32) -> (i32, i32) {
    %c0_i32 = arith.constant 0 : i32
    %c0_i32_0 = arith.constant 0 : i32
    %c0_i32_1 = arith.constant 0 : i32
    return %c0_i32, %c0_i32_0 : i32, i32
  }
  func.func @transform_11(%arg0: i32) -> (i32, i32) {
    %c0_i32 = arith.constant 0 : i32
    %c0_i32_0 = arith.constant 0 : i32
    %c0_i32_1 = arith.constant 0 : i32
    return %c0_i32, %c0_i32_0 : i32, i32
  }
  func.func @transform_12(%arg0: i32) -> (i32, i32) {
    %c0_i32 = arith.constant 0 : i32
    %c0_i32_0 = arith.constant 0 : i32
    %c0_i32_1 = arith.constant 0 : i32
    return %c0_i32, %c0_i32_0 : i32, i32
  }
  func.func @transform_13(%arg0: i32) -> (i32, i32) {
    %c0_i32 = arith.constant 0 : i32
    %c0_i32_0 = arith.constant 0 : i32
    return %arg0, %c0_i32 : i32, i32
  }
}

</mosaic_0001>

<bundles_post_ra>
// kernel: tpu_custom_call.1
= control target key start
LH: loop header
LB: loop body
LE: loop exit
PB: predicated region body
PF: predicated region fallthrough
CT: control target
= control target key end

     0   :  { %s4421_s0 = inlined_call_operand.vmem [shape: f32[32,32], index: 0, kind: input, shape index: {}]   ;;  %s4422_s1 = inlined_call_operand.vmem [shape: f32[1,32], index: 1, kind: input, shape index: {}]   ;;  %s4423_s2 = inlined_call_operand.vmem [shape: f32[1,32], index: 2, kind: input, shape index: {}]   ;;  %s4424_s3 = inlined_call_operand.vmem [shape: bf16[32,96], index: 3, kind: input, shape index: {}]   ;;  %s4425_s4 = inlined_call_operand.vmem [shape: f32[1,96], index: 4, kind: input, shape index: {}]   ;;  %s4426_s5 = inlined_call_operand.vmem [shape: bf16[8,4,32], index: 5, kind: input, shape index: {}]   ;;  %s4427_s6 = inlined_call_operand.vmem [shape: f32[1,32], index: 6, kind: input, shape index: {}]   ;;  %s4428_s7 = inlined_call_operand.vmem [shape: f32[1,32], index: 7, kind: input, shape index: {}]   ;;  %s4429_s8 = inlined_call_operand.vmem [shape: f32[1,32], index: 8, kind: input, shape index: {}]   ;;  %s4430_s9 = inlined_call_operand.vmem [shape: bf16[32,128], index: 9, kind: input, shape index: {}]   ;;  %s4431_s10 = inlined_call_operand.vmem [shape: f32[1,128], index: 10, kind: input, shape index: {}]   ;;  %s4432_s11 = inlined_call_operand.vmem [shape: bf16[128,32], index: 11, kind: input, shape index: {}]   ;;  %s4433_s12 = inlined_call_operand.vmem [shape: f32[1,32], index: 12, kind: input, shape index: {}]   ;;  %s4434_s13 = inlined_call_operand.hbm [shape: f32[32,32], index: 13, kind: output, shape index: {}]  }
   0x1   :  { %4435 = sst [smem:[#allocation5_spill]] %s4421_s0 }
   0x2   :  { %4436 = sst [smem:[#allocation6_spill]] %s4422_s1 }
   0x3   :  { %18 = vsyncpa [#allocation3], 0 }
   0x4   :  { %20 = vsyncpa [#allocation3 + $0x1], 0  ;;  %s3842_s25 = smov 0   ;;  %s3844_s26 = smov 0  }
   0x5   :  { %s3846_s27 = smov 0   ;;  %s3848_s28 = smov 0  }
   0x6 LB: > { %s3863_s29 = sadd.s32 4294967295, %s3742_s28   ;;  %s3065_s30 = sadd.s32 4294967294, %s3742_s28   ;;  %s3742_s28 = sphi %s3848_s28, %s4444_s28   ;;  %s3738_s27 = sphi %s3846_s27, %s4443_s27   ;;  %s3734_s26 = sphi %s3844_s26, %s4442_s26   ;;  %s3730_s25 = sphi %s3842_s25, %s4441_s25  }
   0x7   : > { %s3867_s14 = sadd.s32 1, %s3742_s28   ;;  %s311_s15 = sadd.s32 1, %s3738_s27 }
   0x8   : > { %s308_s16 = ssub.s32 %s3742_s28, %s3867_s14  ;;  %p321_p0 = scmp.ne.s32.totalorder %s3738_s27, %s3734_s26 }
   0x9   : > { %p309_p1 = scmp.eq.s32.totalorder %s308_s16, 0  ;;  %p322_p2 = scmp.eq.s32.totalorder %s3863_s29, 1 }
   0xa   : > { %p327_p3 = scmp.ne.s32.totalorder %s3734_s26, %s3730_s25  ;;  %p328_p4 = scmp.eq.s32.totalorder %s3065_s30, 1 }
   0xb   : > { %s3878_s17 = scalar_select %p309_p1, %s3738_s27, %s311_s15  }
   0xc   : > { %p3880_p5 = por %p322_p2, %p321_p0  ;;  %p3884_p6 = por %p328_p4, %p327_p3 }
   0xd   : > { %p3068_p7 = scmp.ge.s32.totalorder %s3742_s28, 1  ;;  %p391_p8 = scmp.lt.s32.totalorder %s3742_s28, 3 }
   0xf   : > { %p392_p9 = pnand %p3068_p7, %p391_p8 }
  0x10   : > { %s3070_s20 = sshll.u32 (!%p392_p9), %s3863_s29, 1  ;;  %vm447_vm0 = vcmask (!%p392_p9), 261120   ;;  %s4439_s0 = sld [smem:[#allocation5_spill]] (!%p392_p9)  ;;  %v3586_v14 = vld [vmem:[%s4424_s3] sm:$0xff] (!%p392_p9)   ;;  %v3744_v15 = vmov (!%p392_p9), 0.0   ;;  %v3587_v16 = vld [vmem:[%s4424_s3 + $0x8] sm:$0xff] (!%p392_p9)  }
  0x11   : > { %395 = sbr.rel (%p392_p9) target bundleno = 5244 (0x147c), region = 72  ;;  %p436_p10 = scmp.lt.s32.totalorder (!%p392_p9), %s3070_s20, 3  ;;  %3244 = vmatprep.subr.bf16.mxu1 (!%p392_p9), %v3744_v15  ;;  %3270 = vmatprep.subr.bf16.mxu0 (!%p392_p9), %v3744_v15  ;;  %vm3745_vm1 = vmmov (!%p392_p9), 0   ;;  %v3073_v29 = vld [vmem:[%s4423_s2] ss:$0 sm:$0xff] (!%p392_p9)  ;;  %vm563_vm2 = vcmask (!%p392_p9), 31744  }
  0x12   : > { %3245 = vmatpush3.bf16.msra.mxu1 (!%p392_p9), %v3586_v14  ;;  %3248 = vmatprep.mubr.msk.bf16.mxu1 (!%p392_p9), %vm3745_vm1, %v3744_v15  ;;  %s4440_s1 = sld [smem:[#allocation6_spill]] (!%p392_p9)  ;;  %v3074_v34 = vld [vmem:[%s4425_s4] ss:$0 sm:$0xff] (!%p392_p9)  ;;  %s3748_s22 = smov (!%p392_p9), 92   ;;  %vm627_vm3 = vcmask (!%p392_p9), 1043456   ;;  %vm610_vm4 = vcmask (!%p392_p9), 64512  }
  0x13   : > { %3246 = vmatprep.subr.bf16.mxu1 (!%p392_p9), %v3744_v15  ;;  %3272 = vmatprep.mubr.msk.bf16.mxu0 (!%p392_p9), %vm3745_vm1, %v3744_v15  ;;  %s3749_s23 = smov (!%p392_p9), 124   ;;  %s3750_s30 = smov (!%p392_p9), 60   ;;  %vm1009_vm5 = vcmask (!%p392_p9), 1041408  }
  0x14   : > { %s3751_s15 = smov (!%p392_p9), 88   ;;  %s3752_s16 = smov (!%p392_p9), 120  }
  0x16   : > { %3247 = vmatpush3.bf16.msra.mxu1 (!%p392_p9), %v3587_v16 }
  0x17   : > { %3252 = vmatprep.subr.bf16.mxu1 (!%p392_p9), %v3744_v15 }
  0x18   : > { %s4446_s20 = smov (!%p436_p10, %s3070_s20), 3  ;;  %v3072_v25 = vld [vmem:[%s4440_s1] ss:$0 sm:$0xff] }
  0x19   : > { %s3071_s21 = sshll.u32 %s4446_s20, 3  ;;  %s3746_s20 = smov 64  }
  0x1a   : > { %s3894_s24 = scalar_lea.vmem %s4439_s0, %s3071_s21  ;;  %s3747_s21 = smov 96  }
  0x1b   : > { %v443_v0 = vld [vmem:[%s3894_s24] sm:$0xff]  ;;  %v444_v1 = vld [vmem:[%s3894_s24 + $0x8] sm:$0xff]  ;;  %s3769_s0 = smov [#allocation2]  }
  0x1c   : > { %v448_v2 = vsel %vm447_vm0, %v443_v0, 0.0  ;;  %v451_v3 = vsel %vm447_vm0, %v444_v1, 0.0 }
  0x1d   : > { %449 = vadd.xlane.f32.xlu0 %v448_v2 }
  0x21   : > { %452 = vadd.xlane.f32.xlu0 %v451_v3 }
  0xaa   : > { %v450_v4 = vpop.xlane.xlu0 %449 }
  0xab   : > { %v455_v5 = vmul.f32 0.03125, %v450_v4 }
  0xad   : > { %v457_v6 = vsub.f32 %v443_v0, %v455_v5 }
  0xae   : > { %v453_v7 = vpop.xlane.xlu0 %452 }
  0xaf   : > { %v456_v8 = vmul.f32 0.03125, %v453_v7  ;;  %v459_v9 = vmul.f32 %v457_v6, %v457_v6 }
  0xb1   : > { %v458_v10 = vsub.f32 %v444_v1, %v456_v8  ;;  %v461_v11 = vsel %vm447_vm0, %v459_v9, 0.0 }
  0xb2   : > { %462 = vadd.xlane.f32.xlu1 %v461_v11 }
  0xb3   : > { %v460_v12 = vmul.f32 %v458_v10, %v458_v10 }
  0xb5   : > { %v464_v13 = vsel %vm447_vm0, %v460_v12, 0.0 }
  0xb6   : > { %465 = vadd.xlane.f32.xlu1 %v464_v13 }
 0x13f   : > { %v463_v17 = vpop.xlane.xlu1 %462 }
 0x140   : > { %v467_v18 = vmul.f32 0.03125, %v463_v17 }
 0x142   : > { %v469_v19 = vadd.f32 1e-05, %v467_v18 }
 0x143   : > { %v466_v20 = vpop.xlane.xlu1 %465 }
 0x144   : > { %3598 = vrsqrt.f32 %v469_v19  ;;  %v468_v21 = vmul.f32 0.03125, %v466_v20 }
 0x146   : > { %v470_v22 = vadd.f32 1e-05, %v468_v21 }
 0x148   : > { %3600 = vrsqrt.f32 %v470_v22 }
 0x14e   : > { %v3599_v23 = vpop.eup %3598 }
 0x14f   : > { %v473_v24 = vmul.f32 %v3599_v23, %v457_v6 }
 0x151   : > { %v481_v28 = vmul.f32 %v3072_v25, %v473_v24 }
 0x152   : > { %v3601_v26 = vpop.eup %3600 }
 0x153   : > { %v474_v27 = vmul.f32 %v3601_v26, %v458_v10  ;;  %v489_v31 = vadd.f32 %v3073_v29, %v481_v28 }
 0x155   : > { %v482_v30 = vmul.f32 %v3072_v25, %v474_v27 }
 0x157   : > { %v490_v32 = vadd.f32 %v3073_v29, %v482_v30 }
 0x159   : > { %v491_v33 = vpack.c.bf16 %v490_v32, %v489_v31 }
 0x15b   : > { %3249 = vmatmul.mubr.msk.bf16.vlgmr.msra.gmra.mrb[0].mxu1 %vm447_vm0, %v491_v33 }
 0x15c   : > { %3254 = vmatprep.mubr.msk.bf16.mxu1 %vm3745_vm1, %v3744_v15 }
 0x22e   : > { %v552_v35 = vpop.f32.mrb[0].mxu1 }
 0x22f   : > { %v3250_v36 = vpop.f32.mrb[1].mxu1  ;;  %v553_v38 = vadd.f32 %v3074_v34, %v552_v35 }
 0x230   : > { %v555_v37 = vpop.f32.mrb[2].mxu1 }
 0x231   : > { %v556_v39 = vadd.f32 %v3074_v34, %v555_v37  ;;  %v3251_v40 = vpop.f32.mrb[3].mxu1 }
 0x233   : > { %v3928_v41 = vpack.c.bf16 %v556_v39, %v553_v38 }
 0x235   : > { %622 = vrot.lane.b32.xlu1 %v3928_v41, %s3746_s20  ;;  %561 = vrot.lane.b32.xlu0 %v3928_v41, %s3747_s21  ;;  %v3935_v42 = vrot.slane %v3928_v41, 4 }
 0x239   : > { %785 = vrot.lane.b32.xlu0 %v3928_v41, %s3748_s22 }
 0x23d   : > { %895 = vrot.lane.b32.xlu0 %v3935_v42, %s3748_s22  ;;  %s3755_s22 = smov 116  }
 0x2a7   : > { %v562_v43 = vpop.permute.xlu0 %561  ;;  %v623_v45 = vpop.permute.xlu1 %622 }
 0x2a8   : > { %v568_v44 = vsel %vm563_vm2, %v562_v43, 0  ;;  %v629_v46 = vsel %vm627_vm3, %v623_v45, 0 }
 0x2a9   : > { %3253 = vmatpush3.bf16.xpose.msra.mxu1 %v568_v44 }
 0x2aa   : > { %3258 = vmatprep.subr.bf16.mxu1 %v3744_v15 }
 0x2ab   : > { %v786_v59 = vpop.permute.xlu0 %785 }
 0x2ac   : > { %v791_v60 = vsel %vm563_vm2, %v786_v59, 0 }
 0x2af   : > { %v896_v61 = vpop.permute.xlu0 %895 }
 0x2b0   : > { %3255 = vmatmul.mubr.msk.bf16.vlgmr.msra.gmra.mrb[4].mxu1 %vm563_vm2, %v3928_v41  ;;  %v901_v63 = vsel %vm563_vm2, %v896_v61, 0 }
 0x2b1   : > { %3259 = vmatpush3.bf16.msra.mxu1 %v629_v46  ;;  %3260 = vmatprep.mubr.msk.bf16.mxu1 %vm3745_vm1, %v3744_v15 }
 0x2b2   : > { %3264 = vmatprep.subr.bf16.mxu1 %v3744_v15 }
 0x383   : > { %v604_v47 = vpop.f32.mrb[4].mxu1 }
 0x384   : > { %v3256_v48 = vpop.f32.mrb[5].mxu1  ;;  %v611_v49 = vsel %vm610_vm4, %v604_v47, -inf }
 0x385   : > { %612 = vmax.xlane.f32.xlu1 %v611_v49  ;;  %v607_v50 = vpop.f32.mrb[6].mxu1  ;;  %v782_v48 = vld [vmem:[%s4426_s5] sm:$0x3] }
 0x386   : > { %v3257_v51 = vpop.f32.mrb[7].mxu1  ;;  %v1058_v49 = vsel %vm1009_vm5, %v782_v48, 0  ;;  %v3086_v50 = vld [vmem:[%s4426_s5 + $0x2] sm:$0x3] }
 0x387   : > { %v1011_v51 = vsel %vm1009_vm5, %v3086_v50, 0 }
 0x396   : > { %673 = vrot.lane.b32.xlu1 %v3935_v42, %s3747_s21  ;;  %s3754_s21 = smov 84  }
 0x39a   : > { %783 = vrot.lane.b32.xlu1 %v3928_v41, %s3749_s23 }
 0x39e   : > { %893 = vrot.lane.b32.xlu1 %v3935_v42, %s3749_s23  ;;  %s3762_s23 = smov 44  }
 0x412   : > { %v613_v52 = vpop.xlane.xlu1 %612 }
 0x413   : > { %v614_v53 = vsub.f32 %v604_v47, %v613_v52 }
 0x415   : > { %v615_v54 = vmul.f32 1.442695, %v614_v53 }
 0x416   : > { %v674_v56 = vpop.permute.xlu1 %673 }
 0x417   : > { %3602 = vpow2.f32 %v615_v54  ;;  %v679_v58 = vsel %vm563_vm2, %v674_v56, 0 }
 0x41a   : > { %v784_v62 = vpop.permute.xlu1 %783 }
 0x41e   : > { %v894_v0 = vpop.permute.xlu1 %893 }
 0x421   : > { %v3950_v55 = vpop.eup %3602 }
 0x422   : > { %v621_v57 = vpack.c.bf16 %v3950_v55, %v3950_v55  ;;  %v617_v46 = vsel %vm610_vm4, %v3950_v55, 0.0 }
 0x424   : > { %3261 = vmatmul.mubr.msk.bf16.vlgmr.msra.gmra.mrb[8].mxu1 %vm610_vm4, %v621_v57 }
 0x425   : > { %3265 = vmatpush3.bf16.xpose.msra.mxu1 %v679_v58  ;;  %3266 = vmatprep.mubr.msk.bf16.mxu1 %vm3745_vm1, %v3744_v15 }
 0x426   : > { %3276 = vmatprep.subr.bf16.mxu1 %v3744_v15 }
 0x42c   : > { %3267 = vmatmul.mubr.msk.bf16.vlgmr.msra.gmra.mrb[12].mxu1 %vm563_vm2, %v3935_v42 }
 0x42d   : > { %3277 = vmatpush3.bf16.xpose.msra.mxu1 %v791_v60  ;;  %3278 = vmatprep.mubr.msk.bf16.mxu1 %vm3745_vm1, %v3744_v15 }
 0x42e   : > { %3288 = vmatprep.subr.bf16.mxu1 %v3744_v15 }
 0x434   : > { %3279 = vmatmul.mubr.msk.bf16.vlgmr.msra.gmra.mrb[16].mxu1 %vm563_vm2, %v784_v62 }
 0x435   : > { %3289 = vmatpush3.bf16.xpose.msra.mxu1 %v901_v63  ;;  %3290 = vmatprep.mubr.msk.bf16.mxu1 %vm3745_vm1, %v3744_v15 }
 0x436   : > { %3300 = vmatprep.subr.bf16.mxu1 %v3744_v15 }
 0x43c   : > { %3291 = vmatmul.mubr.msk.bf16.vlgmr.msra.gmra.mrb[20].mxu1 %vm563_vm2, %v894_v0 }
 0x43d   : > { %3302 = vmatprep.mubr.msk.bf16.mxu1 %vm3745_vm1, %v3744_v15  ;;  %3301 = vmatpush3.bf16.msra.mxu1 %v1011_v51 }
 0x43e   : > { %3312 = vmatprep.subr.bf16.mxu1 %v3744_v15 }
 0x4f7   : > { %v3973_v1 = vpop.f32.mrb[8].mxu1 }
 0x4f8   : > { %v3262_v2 = vpop.f32.mrb[9].mxu1 }
 0x4f9   : > { %v668_v3 = vpop.f32.mrb[10].mxu1 }
 0x4fa   : > { %v3263_v4 = vpop.f32.mrb[11].mxu1 }
 0x4ff   : > { %v715_v5 = vpop.f32.mrb[12].mxu1 }
 0x500   : > { %v3268_v6 = vpop.f32.mrb[13].mxu1  ;;  %v721_v7 = vsel %vm610_vm4, %v715_v5, -inf }
 0x501   : > { %722 = vmax.xlane.f32.xlu0 %v721_v7  ;;  %v718_v8 = vpop.f32.mrb[14].mxu1 }
 0x502   : > { %v3269_v9 = vpop.f32.mrb[15].mxu1 }
 0x507   : > { %v827_v10 = vpop.f32.mrb[16].mxu1 }
 0x508   : > { %v3280_v11 = vpop.f32.mrb[17].mxu1  ;;  %v833_v12 = vsel %vm610_vm4, %v827_v10, -inf }
 0x509   : > { %834 = vmax.xlane.f32.xlu1 %v833_v12  ;;  %v830_v13 = vpop.f32.mrb[18].mxu1 }
 0x50a   : > { %v3281_v14 = vpop.f32.mrb[19].mxu1 }
 0x50f   : > { %v937_v16 = vpop.f32.mrb[20].mxu1 }
 0x510   : > { %v3292_v17 = vpop.f32.mrb[21].mxu1  ;;  %v943_v18 = vsel %vm610_vm4, %v937_v16, -inf }
 0x511   : > { %944 = vmax.xlane.f32.xlu0 %v943_v18  ;;  %v940_v19 = vpop.f32.mrb[22].mxu1 }
 0x512   : > { %v3293_v20 = vpop.f32.mrb[23].mxu1 }
 0x51a   : > { %844 = vrot.lane.b32.xlu1 %v3928_v41, %s3750_s30 }
 0x51e   : > { %954 = vrot.lane.b32.xlu1 %v3935_v42, %s3750_s30  ;;  %s3763_s30 = smov 72  }
 0x527   : > { %732 = vrot.lane.b32.xlu0 %v3935_v42, %s3746_s20  ;;  %s3753_s20 = smov 56  }
 0x58e   : > { %v723_v21 = vpop.xlane.xlu0 %722 }
 0x58f   : > { %v724_v22 = vsub.f32 %v715_v5, %v723_v21 }
 0x591   : > { %v725_v23 = vmul.f32 1.442695, %v724_v22 }
 0x593   : > { %3604 = vpow2.f32 %v725_v23 }
 0x596   : > { %v835_v24 = vpop.xlane.xlu1 %834 }
 0x597   : > { %v836_v25 = vsub.f32 %v827_v10, %v835_v24 }
 0x599   : > { %v837_v26 = vmul.f32 1.442695, %v836_v25 }
 0x59a   : > { %v845_v33 = vpop.permute.xlu1 %844 }
 0x59b   : > { %3606 = vpow2.f32 %v837_v26  ;;  %v850_v37 = vsel %vm627_vm3, %v845_v33, 0 }
 0x59d   : > { %v3605_v30 = vpop.eup %3604 }
 0x59e   : > { %v945_v27 = vpop.xlane.xlu0 %944  ;;  %v731_v35 = vpack.c.bf16 %v3605_v30, %v3605_v30  ;;  %v955_v38 = vpop.permute.xlu1 %954  ;;  %v727_v47 = vsel %vm610_vm4, %v3605_v30, 0.0 }
 0x59f   : > { %v946_v28 = vsub.f32 %v937_v16, %v945_v27  ;;  %v960_v44 = vsel %vm627_vm3, %v955_v38, 0 }
 0x5a1   : > { %v947_v29 = vmul.f32 1.442695, %v946_v28 }
 0x5a2   : > { %v733_v31 = vpop.permute.xlu0 %732 }
 0x5a3   : > { %3608 = vpow2.f32 %v947_v29  ;;  %v738_v32 = vsel %vm627_vm3, %v733_v31, 0 }
 0x5a4   : > { %3271 = vmatpush3.bf16.msra.mxu0 %v738_v32 }
 0x5a5   : > { %v3607_v34 = vpop.eup %3606  ;;  %3282 = vmatprep.subr.bf16.mxu0 %v3744_v15 }
 0x5a6   : > { %v839_v36 = vsel %vm610_vm4, %v3607_v34, 0.0  ;;  %v843_v40 = vpack.c.bf16 %v3607_v34, %v3607_v34 }
 0x5a7   : > { %840 = vadd.xlane.f32.xlu0 %v839_v36  ;;  %3273 = vmatmul.mubr.msk.bf16.vlgmr.msra.gmra.mrb[0].mxu0 %vm610_vm4, %v731_v35 }
 0x5a8   : > { %3283 = vmatpush3.bf16.msra.mxu0 %v850_v37  ;;  %3284 = vmatprep.mubr.msk.bf16.mxu0 %vm3745_vm1, %v3744_v15 }
 0x5a9   : > { %3294 = vmatprep.subr.bf16.mxu0 %v3744_v15 }
 0x5ad   : > { %v3609_v39 = vpop.eup %3608 }
 0x5ae   : > { %v949_v43 = vsel %vm610_vm4, %v3609_v39, 0.0  ;;  %v953_v45 = vpack.c.bf16 %v3609_v39, %v3609_v39 }
 0x5af   : > { %950 = vadd.xlane.f32.xlu1 %v949_v43  ;;  %3285 = vmatmul.mubr.msk.bf16.vlgmr.msra.gmra.mrb[4].mxu0 %vm610_vm4, %v843_v40 }
 0x5b0   : > { %3295 = vmatpush3.bf16.msra.mxu0 %v960_v44  ;;  %3296 = vmatprep.mubr.msk.bf16.mxu0 %vm3745_vm1, %v3744_v15 }
 0x5b1   : > { %3306 = vmatprep.subr.bf16.mxu0 %v3744_v15 }
 0x5b7   : > { %3297 = vmatmul.mubr.msk.bf16.vlgmr.msra.gmra.mrb[8].mxu0 %vm610_vm4, %v953_v45 }
 0x5b8   : > { %3308 = vmatprep.mubr.msk.bf16.mxu0 %vm3745_vm1, %v3744_v15  ;;  %3307 = vmatpush3.bf16.msra.mxu0 %v1058_v49 }
 0x5b9   : > { %3318 = vmatprep.subr.bf16.mxu0 %v3744_v15 }
 0x5bd   : > { %1103 = vrot.lane.b32.xlu0 %v3928_v41, %s3751_s15 }
 0x5c0   : > { %1101 = vrot.lane.b32.xlu1 %v3928_v41, %s3752_s16 }
 0x5c1   : > { %1213 = vrot.lane.b32.xlu0 %v3935_v42, %s3751_s15  ;;  %s3759_s15 = smov 48  }
 0x5c4   : > { %1211 = vrot.lane.b32.xlu1 %v3935_v42, %s3752_s16  ;;  %s3760_s16 = smov 76  }
 0x5e0   : > { %618 = vadd.xlane.f32.xlu0 %v617_v46 }
 0x5e8   : > { %728 = vadd.xlane.f32.xlu1 %v727_v47 }
 0x5f9   : > { %1272 = vrot.lane.b32.xlu1 %v3935_v42, %s3753_s20 }
 0x5fd   : > { %1375 = vrot.lane.b32.xlu1 %v3928_v41, %s3754_s21 }
 0x601   : > { %1373 = vrot.lane.b32.xlu1 %v3928_v41, %s3755_s22 }
 0x605   : > { %1483 = vrot.lane.b32.xlu1 %v3935_v42, %s3755_s22  ;;  %s3758_s22 = smov 112  }
 0x634   : > { %v841_v52 = vpop.xlane.xlu0 %840 }
 0x638   : > { %v1104_v54 = vpop.permute.xlu0 %1103 }
 0x639   : > { %v1109_v19 = vsel %vm563_vm2, %v1104_v54, 0 }
 0x63c   : > { %v951_v53 = vpop.xlane.xlu1 %950  ;;  %v1214_v56 = vpop.permute.xlu0 %1213 }
 0x63d   : > { %v1219_v20 = vsel %vm563_vm2, %v1214_v56, 0 }
 0x640   : > { %v1102_v55 = vpop.permute.xlu1 %1101 }
 0x644   : > { %v1212_v57 = vpop.permute.xlu1 %1211 }
 0x66d   : > { %v619_v58 = vpop.xlane.xlu0 %618 }
 0x66e   : > { %3610 = vrcp.f32 %v619_v58 }
 0x675   : > { %v729_v59 = vpop.xlane.xlu1 %728 }
 0x676   : > { %3612 = vrcp.f32 %v729_v59 }
 0x677   : > { %3614 = vrcp.f32 %v841_v52 }
 0x678   : > { %v3611_v0 = vpop.eup %3610  ;;  %3616 = vrcp.f32 %v951_v53 }
 0x679   : > { %v671_v3 = vmul.f32 %v3611_v0, %v3973_v1  ;;  %v1273_v52 = vpop.permute.xlu1 %1272 }
 0x67a   : > { %v774_v60 = vpop.f32.mrb[0].mxu0 }
 0x67b   : > { %v3274_v61 = vpop.f32.mrb[1].mxu0 }
 0x67c   : > { %v777_v62 = vpop.f32.mrb[2].mxu0 }
 0x67d   : > { %v3275_v63 = vpop.f32.mrb[3].mxu0 }
 0x680   : > { %v3613_v2 = vpop.eup %3612 }
 0x681   : > { %v780_v4 = vmul.f32 %v3613_v2, %v774_v60  ;;  %v3615_v10 = vpop.eup %3614  ;;  %v3093_v2 = vld [vmem:[%s4426_s5 + $0x4] sm:$0x3] }
 0x682   : > { %v886_v5 = vpop.f32.mrb[4].mxu0  ;;  %v3617_v11 = vpop.eup %3616 }
 0x683   : > { %v781_v6 = vpack.c.bf16 %v780_v4, %v671_v3  ;;  %v3286_v7 = vpop.f32.mrb[5].mxu0  ;;  %v892_v13 = vmul.f32 %v3615_v10, %v886_v5  ;;  %v1328_v3 = vsel %vm1009_vm5, %v3093_v2, 0 }
 0x684   : > { %v889_v8 = vpop.f32.mrb[6].mxu0 }
 0x685   : > { %v3287_v9 = vpop.f32.mrb[7].mxu0  ;;  %3309 = vmatmul.mubr.msk.bf16.vlgmr.msra.gmra.mrb[12].mxu0 %vm563_vm2, %v781_v6 }
 0x686   : > { %3320 = vmatprep.mubr.msk.bf16.mxu0 %vm3745_vm1, %v3744_v15 }
 0x68a   : > { %v996_v12 = vpop.f32.mrb[8].mxu0 }
 0x68b   : > { %v1002_v14 = vmul.f32 %v3617_v11, %v996_v12  ;;  %v3298_v16 = vpop.f32.mrb[9].mxu0 }
 0x68c   : > { %v999_v17 = vpop.f32.mrb[10].mxu0 }
 0x68d   : > { %v1003_v18 = vpack.c.bf16 %v1002_v14, %v892_v13  ;;  %v3299_v1 = vpop.f32.mrb[11].mxu0 }
 0x68f   : > { %3303 = vmatmul.mubr.msk.bf16.vlgmr.msra.gmra.mrb[24].mxu1 %vm563_vm2, %v1003_v18 }
 0x690   : > { %3313 = vmatpush3.bf16.xpose.msra.mxu1 %v1109_v19  ;;  %3314 = vmatprep.mubr.msk.bf16.mxu1 %vm3745_vm1, %v3744_v15 }
 0x691   : > { %3324 = vmatprep.subr.bf16.mxu1 %v3744_v15 }
 0x697   : > { %3315 = vmatmul.mubr.msk.bf16.vlgmr.msra.gmra.mrb[28].mxu1 %vm563_vm2, %v1102_v55  ;;  %v1278_v55 = vsel %vm627_vm3, %v1273_v52, 0 }
 0x698   : > { %3325 = vmatpush3.bf16.xpose.msra.mxu1 %v1219_v20  ;;  %3326 = vmatprep.mubr.msk.bf16.mxu1 %vm3745_vm1, %v3744_v15 }
 0x699   : > { %3336 = vmatprep.subr.bf16.mxu1 %v3744_v15 }
 0x69f   : > { %3327 = vmatmul.mubr.msk.bf16.vlgmr.msra.gmra.mrb[32].mxu1 %vm563_vm2, %v1212_v57  ;;  %v1376_v57 = vpop.permute.xlu1 %1375 }
 0x6a0   : > { %3338 = vmatprep.mubr.msk.bf16.mxu1 %vm3745_vm1, %v3744_v15  ;;  %v1381_v60 = vsel %vm563_vm2, %v1376_v57, 0  ;;  %3337 = vmatpush3.bf16.msra.mxu1 %v1328_v3 }
 0x6a1   : > { %3348 = vmatprep.subr.bf16.mxu1 %v3744_v15 }
 0x6a3   : > { %v1374_v62 = vpop.permute.xlu1 %1373 }
 0x6a7   : > { %v1484_v0 = vpop.permute.xlu1 %1483 }
 0x758   : > { %v1094_v21 = vpop.f32.mrb[12].mxu0 }
 0x759   : > { %v3310_v22 = vpop.f32.mrb[13].mxu0 }
 0x75a   : > { %v1097_v23 = vpop.f32.mrb[14].mxu0 }
 0x75b   : > { %v3311_v24 = vpop.f32.mrb[15].mxu0 }
 0x762   : > { %v1047_v25 = vpop.f32.mrb[24].mxu1 }
 0x763   : > { %v4039_v26 = vadd.f32 %v1094_v21, %v1047_v25  ;;  %v3304_v27 = vpop.f32.mrb[25].mxu1 }
 0x764   : > { %v1050_v28 = vpop.f32.mrb[26].mxu1 }
 0x765   : > { %v4041_v29 = vadd.f32 %v1097_v23, %v1050_v28  ;;  %v3305_v30 = vpop.f32.mrb[27].mxu1 }
 0x76a   : > { %v1145_v31 = vpop.f32.mrb[28].mxu1 }
 0x76b   : > { %v3316_v32 = vpop.f32.mrb[29].mxu1  ;;  %v1151_v33 = vsel %vm610_vm4, %v1145_v31, -inf }
 0x76c   : > { %1152 = vmax.xlane.f32.xlu0 %v1151_v33  ;;  %v1148_v34 = vpop.f32.mrb[30].mxu1 }
 0x76d   : > { %v3317_v35 = vpop.f32.mrb[31].mxu1 }
 0x772   : > { %v1255_v36 = vpop.f32.mrb[32].mxu1 }
 0x773   : > { %v3328_v37 = vpop.f32.mrb[33].mxu1  ;;  %v1261_v38 = vsel %vm610_vm4, %v1255_v36, -inf }
 0x774   : > { %1262 = vmax.xlane.f32.xlu0 %v1261_v38  ;;  %v1258_v39 = vpop.f32.mrb[34].mxu1 }
 0x775   : > { %v3329_v40 = vpop.f32.mrb[35].mxu1 }
 0x78a   : > { %1162 = vrot.lane.b32.xlu0 %v3928_v41, %s3753_s20  ;;  %s3756_s20 = smov 52  }
 0x78e   : > { %1485 = vrot.lane.b32.xlu0 %v3935_v42, %s3754_s21  ;;  %s3757_s21 = smov 80  }
 0x7f9   : > { %v1153_v43 = vpop.xlane.xlu0 %1152 }
 0x7fa   : > { %v1154_v44 = vsub.f32 %v1145_v31, %v1153_v43 }
 0x7fc   : > { %v1155_v45 = vmul.f32 1.442695, %v1154_v44 }
 0x7fe   : > { %3618 = vpow2.f32 %v1155_v45 }
 0x801   : > { %v1263_v46 = vpop.xlane.xlu0 %1262 }
 0x802   : > { %v1264_v47 = vsub.f32 %v1255_v36, %v1263_v46 }
 0x804   : > { %v1265_v48 = vmul.f32 1.442695, %v1264_v47 }
 0x805   : > { %v1163_v49 = vpop.permute.xlu0 %1162 }
 0x806   : > { %3620 = vpow2.f32 %v1265_v48  ;;  %v1168_v50 = vsel %vm627_vm3, %v1163_v49, 0 }
 0x807   : > { %3319 = vmatpush3.bf16.msra.mxu0 %v1168_v50 }
 0x808   : > { %v3619_v51 = vpop.eup %3618  ;;  %3330 = vmatprep.subr.bf16.mxu0 %v3744_v15 }
 0x809   : > { %v1157_v53 = vsel %vm610_vm4, %v3619_v51, 0.0  ;;  %v1161_v54 = vpack.c.bf16 %v3619_v51, %v3619_v51  ;;  %v1486_v61 = vpop.permute.xlu0 %1485 }
 0x80a   : > { %1158 = vadd.xlane.f32.xlu0 %v1157_v53  ;;  %v1491_v63 = vsel %vm563_vm2, %v1486_v61, 0  ;;  %v3099_v61 = vld [vmem:[%s4426_s5 + $0x6] sm:$0x3] }
 0x80b   : > { %3321 = vmatmul.mubr.msk.bf16.vlgmr.msra.gmra.mrb[16].mxu0 %vm610_vm4, %v1161_v54 }
 0x80c   : > { %3331 = vmatpush3.bf16.msra.mxu0 %v1278_v55  ;;  %3332 = vmatprep.mubr.msk.bf16.mxu0 %vm3745_vm1, %v3744_v15 }
 0x80d   : > { %3342 = vmatprep.subr.bf16.mxu0 %v3744_v15 }
 0x810   : > { %v3621_v56 = vpop.eup %3620 }
 0x811   : > { %v1267_v58 = vsel %vm610_vm4, %v3621_v56, 0.0  ;;  %v1271_v59 = vpack.c.bf16 %v3621_v56, %v3621_v56 }
 0x812   : > { %1268 = vadd.xlane.f32.xlu1 %v1267_v58 }
 0x813   : > { %3333 = vmatmul.mubr.msk.bf16.vlgmr.msra.gmra.mrb[20].mxu0 %vm610_vm4, %v1271_v59 }
 0x814   : > { %3344 = vmatprep.mubr.msk.bf16.mxu0 %vm3745_vm1, %v3744_v15 }
 0x815   : > { %3343 = vmatpush3.bf16.xpose.msra.mxu0 %v1381_v60 }
 0x816   : > { %3354 = vmatprep.subr.bf16.mxu0 %v3744_v15 }
 0x81c   : > { %3345 = vmatmul.mubr.msk.bf16.vlgmr.msra.gmra.mrb[24].mxu0 %vm563_vm2, %v1374_v62  ;;  %v1600_v62 = vsel %vm1009_vm5, %v3099_v61, 0 }
 0x81d   : > { %3355 = vmatpush3.bf16.xpose.msra.mxu0 %v1491_v63  ;;  %3356 = vmatprep.mubr.msk.bf16.mxu0 %vm3745_vm1, %v3744_v15 }
 0x81e   : > { %3366 = vmatprep.subr.bf16.mxu0 %v3744_v15 }
 0x823   : > { %1544 = vrot.lane.b32.xlu1 %v3935_v42, %s3756_s20 }
 0x824   : > { %3357 = vmatmul.mubr.msk.bf16.vlgmr.msra.gmra.mrb[28].mxu0 %vm563_vm2, %v1484_v0 }
 0x825   : > { %3368 = vmatprep.mubr.msk.bf16.mxu0 %vm3745_vm1, %v3744_v15  ;;  %3367 = vmatpush3.bf16.msra.mxu0 %v1600_v62 }
 0x826   : > { %3378 = vmatprep.subr.bf16.mxu0 %v3744_v15 }
 0x827   : > { %1647 = vrot.lane.b32.xlu1 %v3928_v41, %s3757_s21 }
 0x82b   : > { %1645 = vrot.lane.b32.xlu1 %v3928_v41, %s3758_s22 }
 0x82f   : > { %1755 = vrot.lane.b32.xlu1 %v3935_v42, %s3758_s22  ;;  %s3766_s22 = smov 68  }
 0x897   : > { %v1159_v4 = vpop.xlane.xlu0 %1158 }
 0x898   : > { %3622 = vrcp.f32 %v1159_v4 }
 0x89f   : > { %v1269_v5 = vpop.xlane.xlu1 %1268 }
 0x8a0   : > { %3624 = vrcp.f32 %v1269_v5 }
 0x8a2   : > { %v3623_v10 = vpop.eup %3622 }
 0x8a3   : > { %v1545_v40 = vpop.permute.xlu1 %1544 }
 0x8a4   : > { %v1550_v45 = vsel %vm627_vm3, %v1545_v40, 0 }
 0x8a7   : > { %v1648_v47 = vpop.permute.xlu1 %1647 }
 0x8a8   : > { %v1653_v50 = vsel %vm563_vm2, %v1648_v47, 0 }
 0x8aa   : > { %v3625_v11 = vpop.eup %3624 }
 0x8ab   : > { %v1646_v52 = vpop.permute.xlu1 %1645 }
 0x8af   : > { %v1756_v54 = vpop.permute.xlu1 %1755 }
 0x8de   : > { %v1204_v6 = vpop.f32.mrb[16].mxu0 }
 0x8df   : > { %v3322_v7 = vpop.f32.mrb[17].mxu0  ;;  %v1210_v13 = vmul.f32 %v3623_v10, %v1204_v6 }
 0x8e0   : > { %v1207_v8 = vpop.f32.mrb[18].mxu0 }
 0x8e1   : > { %v3323_v9 = vpop.f32.mrb[19].mxu0 }
 0x8e6   : > { %v1314_v12 = vpop.f32.mrb[20].mxu0 }
 0x8e7   : > { %v1320_v14 = vmul.f32 %v3625_v11, %v1314_v12  ;;  %v3334_v16 = vpop.f32.mrb[21].mxu0 }
 0x8e8   : > { %v1317_v17 = vpop.f32.mrb[22].mxu0 }
 0x8e9   : > { %v1321_v18 = vpack.c.bf16 %v1320_v14, %v1210_v13  ;;  %v3335_v1 = vpop.f32.mrb[23].mxu0 }
 0x8eb   : > { %3339 = vmatmul.mubr.msk.bf16.vlgmr.msra.gmra.mrb[36].mxu1 %vm563_vm2, %v1321_v18 }
 0x8ec   : > { %3350 = vmatprep.mubr.msk.bf16.mxu1 %vm3745_vm1, %v3744_v15 }
 0x8ef   : > { %v1417_v19 = vpop.f32.mrb[24].mxu0 }
 0x8f0   : > { %v3346_v20 = vpop.f32.mrb[25].mxu0  ;;  %v1423_v21 = vsel %vm610_vm4, %v1417_v19, -inf }
 0x8f1   : > { %1424 = vmax.xlane.f32.xlu0 %v1423_v21  ;;  %v1420_v22 = vpop.f32.mrb[26].mxu0 }
 0x8f2   : > { %v3347_v23 = vpop.f32.mrb[27].mxu0 }
 0x8f7   : > { %v1527_v24 = vpop.f32.mrb[28].mxu0 }
 0x8f8   : > { %v3358_v25 = vpop.f32.mrb[29].mxu0  ;;  %v1533_v27 = vsel %vm610_vm4, %v1527_v24, -inf }
 0x8f9   : > { %1534 = vmax.xlane.f32.xlu0 %v1533_v27  ;;  %v1530_v28 = vpop.f32.mrb[30].mxu0 }
 0x8fa   : > { %v3359_v30 = vpop.f32.mrb[31].mxu0 }
 0x90f   : > { %1434 = vrot.lane.b32.xlu0 %v3928_v41, %s3756_s20  ;;  %s3761_s20 = smov 108  }
 0x913   : > { %1757 = vrot.lane.b32.xlu0 %v3935_v42, %s3757_s21  ;;  %s3765_s21 = smov 40  }
 0x97e   : > { %v1425_v31 = vpop.xlane.xlu0 %1424 }
 0x97f   : > { %v1426_v32 = vsub.f32 %v1417_v19, %v1425_v31 }
 0x981   : > { %v1427_v33 = vmul.f32 1.442695, %v1426_v32 }
 0x983   : > { %3626 = vpow2.f32 %v1427_v33 }
 0x986   : > { %v1535_v34 = vpop.xlane.xlu0 %1534 }
 0x987   : > { %v1536_v35 = vsub.f32 %v1527_v24, %v1535_v34 }
 0x989   : > { %v1537_v36 = vmul.f32 1.442695, %v1536_v35 }
 0x98a   : > { %v1435_v37 = vpop.permute.xlu0 %1434 }
 0x98b   : > { %3628 = vpow2.f32 %v1537_v36  ;;  %v1440_v38 = vsel %vm627_vm3, %v1435_v37, 0 }
 0x98c   : > { %3349 = vmatpush3.bf16.msra.mxu1 %v1440_v38 }
 0x98d   : > { %v3627_v39 = vpop.eup %3626  ;;  %3360 = vmatprep.subr.bf16.mxu1 %v3744_v15 }
 0x98e   : > { %v1429_v43 = vsel %vm610_vm4, %v3627_v39, 0.0  ;;  %v1433_v44 = vpack.c.bf16 %v3627_v39, %v3627_v39  ;;  %v1758_v51 = vpop.permute.xlu0 %1757 }
 0x98f   : > { %1430 = vadd.xlane.f32.xlu0 %v1429_v43  ;;  %v1763_v53 = vsel %vm563_vm2, %v1758_v51, 0 }
 0x990   : > { %3351 = vmatmul.mubr.msk.bf16.vlgmr.msra.gmra.mrb[40].mxu1 %vm610_vm4, %v1433_v44 }
 0x991   : > { %3361 = vmatpush3.bf16.msra.mxu1 %v1550_v45  ;;  %3362 = vmatprep.mubr.msk.bf16.mxu1 %vm3745_vm1, %v3744_v15 }
 0x992   : > { %3372 = vmatprep.subr.bf16.mxu1 %v3744_v15 }
 0x995   : > { %v3629_v46 = vpop.eup %3628 }
 0x996   : > { %v1539_v48 = vsel %vm610_vm4, %v3629_v46, 0.0  ;;  %v1543_v49 = vpack.c.bf16 %v3629_v46, %v3629_v46 }
 0x997   : > { %1540 = vadd.xlane.f32.xlu1 %v1539_v48 }
 0x998   : > { %3363 = vmatmul.mubr.msk.bf16.vlgmr.msra.gmra.mrb[44].mxu1 %vm610_vm4, %v1543_v49 }
 0x999   : > { %3374 = vmatprep.mubr.msk.bf16.mxu1 %vm3745_vm1, %v3744_v15 }
 0x99a   : > { %3373 = vmatpush3.bf16.xpose.msra.mxu1 %v1653_v50 }
 0x99b   : > { %3384 = vmatprep.subr.bf16.mxu1 %v3744_v15 }
 0x9a1   : > { %3375 = vmatmul.mubr.msk.bf16.vlgmr.msra.gmra.mrb[48].mxu1 %vm563_vm2, %v1646_v52 }
 0x9a2   : > { %3385 = vmatpush3.bf16.xpose.msra.mxu1 %v1763_v53  ;;  %3386 = vmatprep.mubr.msk.bf16.mxu1 %vm3745_vm1, %v3744_v15 }
 0x9a3   : > { %3396 = vmatprep.subr.bf16.mxu1 %v3744_v15 }
 0x9a8   : > { %1816 = vrot.lane.b32.xlu1 %v3935_v42, %s3759_s15 }
 0x9a9   : > { %3387 = vmatmul.mubr.msk.bf16.vlgmr.msra.gmra.mrb[52].mxu1 %vm563_vm2, %v1756_v54 }
 0x9aa   : > { %3398 = vmatprep.mubr.msk.bf16.mxu1 %vm3745_vm1, %v3744_v15 }
 0x9ac   : > { %1919 = vrot.lane.b32.xlu1 %v3928_v41, %s3760_s16 }
 0x9b0   : > { %1917 = vrot.lane.b32.xlu1 %v3928_v41, %s3761_s20 }
 0x9b4   : > { %2027 = vrot.lane.b32.xlu1 %v3935_v42, %s3761_s20  ;;  %s432_s20 = sand.u32 1, %s3734_s26  }
 0x9be   : > { %v1364_v55 = vpop.f32.mrb[36].mxu1 }
 0x9bf   : > { %v4120_v56 = vadd.f32 %v1364_v55, %v4039_v26  ;;  %v3340_v57 = vpop.f32.mrb[37].mxu1  ;;  %v3105_v55 = vld [vmem:[%s4426_s5 + $0x8] sm:$0x3] }
 0x9c0   : > { %v1367_v58 = vpop.f32.mrb[38].mxu1  ;;  %v1872_v57 = vsel %vm1009_vm5, %v3105_v55, 0 }
 0x9c1   : > { %v4123_v59 = vadd.f32 %v1367_v58, %v4041_v29  ;;  %v3341_v60 = vpop.f32.mrb[39].mxu1  ;;  %3397 = vmatpush3.bf16.msra.mxu1 %v1872_v57 }
 0x9c2   : > { %3408 = vmatprep.subr.bf16.mxu1 %v3744_v15 }
 0xa1c   : > { %v1431_v63 = vpop.xlane.xlu0 %1430 }
 0xa1d   : > { %3630 = vrcp.f32 %v1431_v63 }
 0xa24   : > { %v1541_v0 = vpop.xlane.xlu1 %1540 }
 0xa25   : > { %3632 = vrcp.f32 %v1541_v0 }
 0xa27   : > { %v3631_v29 = vpop.eup %3630 }
 0xa28   : > { %v1817_v34 = vpop.permute.xlu1 %1816 }
 0xa29   : > { %v1822_v37 = vsel %vm627_vm3, %v1817_v34, 0 }
 0xa2c   : > { %v1920_v39 = vpop.permute.xlu1 %1919 }
 0xa2d   : > { %v1925_v44 = vsel %vm563_vm2, %v1920_v39, 0 }
 0xa2f   : > { %v3633_v5 = vpop.eup %3632 }
 0xa30   : > { %v1918_v46 = vpop.permute.xlu1 %1917 }
 0xa34   : > { %v2028_v48 = vpop.permute.xlu1 %2027 }
 0xa63   : > { %v1476_v26 = vpop.f32.mrb[40].mxu1 }
 0xa64   : > { %v3352_v2 = vpop.f32.mrb[41].mxu1  ;;  %v1482_v7 = vmul.f32 %v3631_v29, %v1476_v26 }
 0xa65   : > { %v1479_v3 = vpop.f32.mrb[42].mxu1 }
 0xa66   : > { %v3353_v4 = vpop.f32.mrb[43].mxu1 }
 0xa6b   : > { %v1586_v6 = vpop.f32.mrb[44].mxu1 }
 0xa6c   : > { %v1592_v8 = vmul.f32 %v3633_v5, %v1586_v6  ;;  %v3364_v9 = vpop.f32.mrb[45].mxu1 }
 0xa6d   : > { %v1589_v10 = vpop.f32.mrb[46].mxu1 }
 0xa6e   : > { %v1593_v11 = vpack.c.bf16 %v1592_v8, %v1482_v7  ;;  %v3365_v12 = vpop.f32.mrb[47].mxu1 }
 0xa70   : > { %3369 = vmatmul.mubr.msk.bf16.vlgmr.msra.gmra.mrb[32].mxu0 %vm563_vm2, %v1593_v11 }
 0xa71   : > { %3380 = vmatprep.mubr.msk.bf16.mxu0 %vm3745_vm1, %v3744_v15 }
 0xa74   : > { %v1689_v13 = vpop.f32.mrb[48].mxu1 }
 0xa75   : > { %v3376_v14 = vpop.f32.mrb[49].mxu1  ;;  %v1695_v16 = vsel %vm610_vm4, %v1689_v13, -inf }
 0xa76   : > { %1696 = vmax.xlane.f32.xlu0 %v1695_v16  ;;  %v1692_v17 = vpop.f32.mrb[50].mxu1 }
 0xa77   : > { %v3377_v18 = vpop.f32.mrb[51].mxu1 }
 0xa7c   : > { %v1799_v1 = vpop.f32.mrb[52].mxu1 }
 0xa7d   : > { %v3388_v19 = vpop.f32.mrb[53].mxu1  ;;  %v1805_v20 = vsel %vm610_vm4, %v1799_v1, -inf }
 0xa7e   : > { %1806 = vmax.xlane.f32.xlu0 %v1805_v20  ;;  %v1802_v21 = vpop.f32.mrb[54].mxu1 }
 0xa7f   : > { %v3389_v22 = vpop.f32.mrb[55].mxu1 }
 0xa94   : > { %1706 = vrot.lane.b32.xlu0 %v3928_v41, %s3759_s15  ;;  %s3764_s15 = smov 104  }
 0xa98   : > { %2029 = vrot.lane.b32.xlu0 %v3935_v42, %s3760_s16  ;;  %s3768_s16 = smov 36  }
 0xb03   : > { %v1697_v23 = vpop.xlane.xlu0 %1696 }
 0xb04   : > { %v1698_v24 = vsub.f32 %v1689_v13, %v1697_v23 }
 0xb06   : > { %v1699_v25 = vmul.f32 1.442695, %v1698_v24 }
 0xb08   : > { %3634 = vpow2.f32 %v1699_v25 }
 0xb0b   : > { %v1807_v27 = vpop.xlane.xlu0 %1806 }
 0xb0c   : > { %v1808_v28 = vsub.f32 %v1799_v1, %v1807_v27 }
 0xb0e   : > { %v1809_v30 = vmul.f32 1.442695, %v1808_v28 }
 0xb0f   : > { %v1707_v31 = vpop.permute.xlu0 %1706 }
 0xb10   : > { %3636 = vpow2.f32 %v1809_v30  ;;  %v1712_v32 = vsel %vm627_vm3, %v1707_v31, 0 }
 0xb11   : > { %3379 = vmatpush3.bf16.msra.mxu0 %v1712_v32 }
 0xb12   : > { %v3635_v33 = vpop.eup %3634  ;;  %3390 = vmatprep.subr.bf16.mxu0 %v3744_v15 }
 0xb13   : > { %v1701_v35 = vsel %vm610_vm4, %v3635_v33, 0.0  ;;  %v1705_v36 = vpack.c.bf16 %v3635_v33, %v3635_v33  ;;  %v2030_v45 = vpop.permute.xlu0 %2029 }
 0xb14   : > { %1702 = vadd.xlane.f32.xlu0 %v1701_v35  ;;  %v2035_v47 = vsel %vm563_vm2, %v2030_v45, 0 }
 0xb15   : > { %3381 = vmatmul.mubr.msk.bf16.vlgmr.msra.gmra.mrb[36].mxu0 %vm610_vm4, %v1705_v36 }
 0xb16   : > { %3391 = vmatpush3.bf16.msra.mxu0 %v1822_v37  ;;  %3392 = vmatprep.mubr.msk.bf16.mxu0 %vm3745_vm1, %v3744_v15 }
 0xb17   : > { %3402 = vmatprep.subr.bf16.mxu0 %v3744_v15 }
 0xb1a   : > { %v3637_v38 = vpop.eup %3636 }
 0xb1b   : > { %v1811_v40 = vsel %vm610_vm4, %v3637_v38, 0.0  ;;  %v1815_v43 = vpack.c.bf16 %v3637_v38, %v3637_v38 }
 0xb1c   : > { %1812 = vadd.xlane.f32.xlu1 %v1811_v40 }
 0xb1d   : > { %3393 = vmatmul.mubr.msk.bf16.vlgmr.msra.gmra.mrb[40].mxu0 %vm610_vm4, %v1815_v43 }
 0xb1e   : > { %3404 = vmatprep.mubr.msk.bf16.mxu0 %vm3745_vm1, %v3744_v15 }
 0xb1f   : > { %3403 = vmatpush3.bf16.xpose.msra.mxu0 %v1925_v44 }
 0xb20   : > { %3414 = vmatprep.subr.bf16.mxu0 %v3744_v15 }
 0xb26   : > { %3405 = vmatmul.mubr.msk.bf16.vlgmr.msra.gmra.mrb[44].mxu0 %vm563_vm2, %v1918_v46 }
 0xb27   : > { %3415 = vmatpush3.bf16.xpose.msra.mxu0 %v2035_v47  ;;  %3416 = vmatprep.mubr.msk.bf16.mxu0 %vm3745_vm1, %v3744_v15 }
 0xb28   : > { %3426 = vmatprep.subr.bf16.mxu0 %v3744_v15 }
 0xb2d   : > { %2088 = vrot.lane.b32.xlu1 %v3935_v42, %s3762_s23 }
 0xb2e   : > { %3417 = vmatmul.mubr.msk.bf16.vlgmr.msra.gmra.mrb[48].mxu0 %vm563_vm2, %v2028_v48 }
 0xb2f   : > { %3428 = vmatprep.mubr.msk.bf16.mxu0 %vm3745_vm1, %v3744_v15 }
 0xb31   : > { %2191 = vrot.lane.b32.xlu1 %v3928_v41, %s3763_s30 }
 0xb35   : > { %2189 = vrot.lane.b32.xlu1 %v3928_v41, %s3764_s15 }
 0xb39   : > { %2299 = vrot.lane.b32.xlu1 %v3935_v42, %s3764_s15 }
 0xb43   : > { %v1636_v49 = vpop.f32.mrb[32].mxu0 }
 0xb44   : > { %v4168_v50 = vadd.f32 %v1636_v49, %v4120_v56  ;;  %v3370_v51 = vpop.f32.mrb[33].mxu0  ;;  %v3111_v49 = vld [vmem:[%s4426_s5 + $0xa] sm:$0x3] }
 0xb45   : > { %v1639_v52 = vpop.f32.mrb[34].mxu0  ;;  %v2144_v51 = vsel %vm1009_vm5, %v3111_v49, 0 }
 0xb46   : > { %v4171_v53 = vadd.f32 %v1639_v52, %v4123_v59  ;;  %v3371_v54 = vpop.f32.mrb[35].mxu0  ;;  %3427 = vmatpush3.bf16.msra.mxu0 %v2144_v51 }
 0xb47   : > { %3438 = vmatprep.subr.bf16.mxu0 %v3744_v15 }
 0xba1   : > { %v1703_v58 = vpop.xlane.xlu0 %1702 }
 0xba2   : > { %3638 = vrcp.f32 %v1703_v58 }
 0xba9   : > { %v1813_v60 = vpop.xlane.xlu1 %1812 }
 0xbaa   : > { %3640 = vrcp.f32 %v1813_v60 }
 0xbac   : > { %v3639_v59 = vpop.eup %3638 }
 0xbad   : > { %v2089_v27 = vpop.permute.xlu1 %2088 }
 0xbae   : > { %v2094_v31 = vsel %vm627_vm3, %v2089_v27, 0 }
 0xbb1   : > { %v2192_v33 = vpop.permute.xlu1 %2191 }
 0xbb2   : > { %v2197_v36 = vsel %vm563_vm2, %v2192_v33, 0 }
 0xbb4   : > { %v3641_v0 = vpop.eup %3640 }
 0xbb5   : > { %v2190_v38 = vpop.permute.xlu1 %2189 }
 0xbb9   : > { %v2300_v40 = vpop.permute.xlu1 %2299 }
 0xbe8   : > { %v1748_v56 = vpop.f32.mrb[36].mxu0 }
 0xbe9   : > { %v3382_v61 = vpop.f32.mrb[37].mxu0  ;;  %v1754_v2 = vmul.f32 %v3639_v59, %v1748_v56 }
 0xbea   : > { %v1751_v62 = vpop.f32.mrb[38].mxu0 }
 0xbeb   : > { %v3383_v63 = vpop.f32.mrb[39].mxu0 }
 0xbf0   : > { %v1858_v26 = vpop.f32.mrb[40].mxu0 }
 0xbf1   : > { %v1864_v3 = vmul.f32 %v3641_v0, %v1858_v26  ;;  %v3394_v4 = vpop.f32.mrb[41].mxu0 }
 0xbf2   : > { %v1861_v29 = vpop.f32.mrb[42].mxu0 }
 0xbf3   : > { %v1865_v5 = vpack.c.bf16 %v1864_v3, %v1754_v2  ;;  %v3395_v6 = vpop.f32.mrb[43].mxu0 }
 0xbf5   : > { %3399 = vmatmul.mubr.msk.bf16.vlgmr.msra.gmra.mrb[56].mxu1 %vm563_vm2, %v1865_v5 }
 0xbf6   : > { %3410 = vmatprep.mubr.msk.bf16.mxu1 %vm3745_vm1, %v3744_v15 }
 0xbf9   : > { %v1961_v7 = vpop.f32.mrb[44].mxu0 }
 0xbfa   : > { %v3406_v8 = vpop.f32.mrb[45].mxu0  ;;  %v1967_v9 = vsel %vm610_vm4, %v1961_v7, -inf }
 0xbfb   : > { %1968 = vmax.xlane.f32.xlu0 %v1967_v9  ;;  %v1964_v10 = vpop.f32.mrb[46].mxu0 }
 0xbfc   : > { %v3407_v11 = vpop.f32.mrb[47].mxu0 }
 0xc01   : > { %v2071_v12 = vpop.f32.mrb[48].mxu0 }
 0xc02   : > { %v3418_v13 = vpop.f32.mrb[49].mxu0  ;;  %v2077_v14 = vsel %vm610_vm4, %v2071_v12, -inf }
 0xc03   : > { %2078 = vmax.xlane.f32.xlu0 %v2077_v14  ;;  %v2074_v16 = vpop.f32.mrb[50].mxu0 }
 0xc04   : > { %v3419_v17 = vpop.f32.mrb[51].mxu0 }
 0xc19   : > { %1978 = vrot.lane.b32.xlu0 %v3928_v41, %s3762_s23  ;;  %s3767_s23 = smov 100  }
 0xc1d   : > { %2301 = vrot.lane.b32.xlu0 %v3935_v42, %s3763_s30 }
 0xc88   : > { %v1969_v18 = vpop.xlane.xlu0 %1968 }
 0xc89   : > { %v1970_v1 = vsub.f32 %v1961_v7, %v1969_v18 }
 0xc8b   : > { %v1971_v19 = vmul.f32 1.442695, %v1970_v1 }
 0xc8d   : > { %3642 = vpow2.f32 %v1971_v19 }
 0xc90   : > { %v2079_v20 = vpop.xlane.xlu0 %2078 }
 0xc91   : > { %v2080_v21 = vsub.f32 %v2071_v12, %v2079_v20 }
 0xc93   : > { %v2081_v22 = vmul.f32 1.442695, %v2080_v21 }
 0xc94   : > { %v1979_v23 = vpop.permute.xlu0 %1978 }
 0xc95   : > { %3644 = vpow2.f32 %v2081_v22  ;;  %v1984_v24 = vsel %vm627_vm3, %v1979_v23, 0 }
 0xc96   : > { %3409 = vmatpush3.bf16.msra.mxu1 %v1984_v24 }
 0xc97   : > { %v3643_v25 = vpop.eup %3642  ;;  %3420 = vmatprep.subr.bf16.mxu1 %v3744_v15 }
 0xc98   : > { %v1973_v28 = vsel %vm610_vm4, %v3643_v25, 0.0  ;;  %v1977_v30 = vpack.c.bf16 %v3643_v25, %v3643_v25  ;;  %v2302_v37 = vpop.permute.xlu0 %2301 }
 0xc99   : > { %1974 = vadd.xlane.f32.xlu0 %v1973_v28  ;;  %v2307_v39 = vsel %vm563_vm2, %v2302_v37, 0 }
 0xc9a   : > { %3411 = vmatmul.mubr.msk.bf16.vlgmr.msra.gmra.mrb[60].mxu1 %vm610_vm4, %v1977_v30 }
 0xc9b   : > { %3421 = vmatpush3.bf16.msra.mxu1 %v2094_v31  ;;  %3422 = vmatprep.mubr.msk.bf16.mxu1 %vm3745_vm1, %v3744_v15 }
 0xc9c   : > { %3432 = vmatprep.subr.bf16.mxu1 %v3744_v15 }
 0xc9f   : > { %v3645_v32 = vpop.eup %3644 }
 0xca0   : > { %v2083_v34 = vsel %vm610_vm4, %v3645_v32, 0.0  ;;  %v2087_v35 = vpack.c.bf16 %v3645_v32, %v3645_v32 }
 0xca1   : > { %2084 = vadd.xlane.f32.xlu1 %v2083_v34 }
 0xca2   : > { %3423 = vmatmul.mubr.msk.bf16.vlgmr.msra.gmra.mrb[64].mxu1 %vm610_vm4, %v2087_v35 }
 0xca3   : > { %3434 = vmatprep.mubr.msk.bf16.mxu1 %vm3745_vm1, %v3744_v15 }
 0xca4   : > { %3433 = vmatpush3.bf16.xpose.msra.mxu1 %v2197_v36 }
 0xca5   : > { %3444 = vmatprep.subr.bf16.mxu1 %v3744_v15 }
 0xcab   : > { %3435 = vmatmul.mubr.msk.bf16.vlgmr.msra.gmra.mrb[68].mxu1 %vm563_vm2, %v2190_v38 }
 0xcac   : > { %3445 = vmatpush3.bf16.xpose.msra.mxu1 %v2307_v39  ;;  %3446 = vmatprep.mubr.msk.bf16.mxu1 %vm3745_vm1, %v3744_v15 }
 0xcad   : > { %3456 = vmatprep.subr.bf16.mxu1 %v3744_v15 }
 0xcb2   : > { %2360 = vrot.lane.b32.xlu1 %v3935_v42, %s3765_s21 }
 0xcb3   : > { %3447 = vmatmul.mubr.msk.bf16.vlgmr.msra.gmra.mrb[72].mxu1 %vm563_vm2, %v2300_v40 }
 0xcb4   : > { %3458 = vmatprep.mubr.msk.bf16.mxu1 %vm3745_vm1, %v3744_v15 }
 0xcb6   : > { %2463 = vrot.lane.b32.xlu1 %v3928_v41, %s3766_s22 }
 0xcba   : > { %2461 = vrot.lane.b32.xlu1 %v3928_v41, %s3767_s23 }
 0xcbe   : > { %2571 = vrot.lane.b32.xlu1 %v3935_v42, %s3767_s23 }
 0xcc8   : > { %v1908_v43 = vpop.f32.mrb[56].mxu1 }
 0xcc9   : > { %v4216_v44 = vadd.f32 %v1908_v43, %v4168_v50  ;;  %v3400_v45 = vpop.f32.mrb[57].mxu1  ;;  %v3117_v43 = vld [vmem:[%s4426_s5 + $0xc] sm:$0x3] }
 0xcca   : > { %v1911_v46 = vpop.f32.mrb[58].mxu1 }
 0xccb   : > { %v4219_v47 = vadd.f32 %v1911_v46, %v4171_v53  ;;  %v3401_v48 = vpop.f32.mrb[59].mxu1 }
 0xd26   : > { %v1975_v52 = vpop.xlane.xlu0 %1974 }
 0xd27   : > { %3646 = vrcp.f32 %v1975_v52 }
 0xd2e   : > { %v2085_v54 = vpop.xlane.xlu1 %2084 }
 0xd2f   : > { %3648 = vrcp.f32 %v2085_v54 }
 0xd31   : > { %v3647_v53 = vpop.eup %3646 }
 0xd32   : > { %v2361_v20 = vpop.permute.xlu1 %2360 }
 0xd33   : > { %v2366_v23 = vsel %vm627_vm3, %v2361_v20, 0 }
 0xd36   : > { %v2464_v25 = vpop.permute.xlu1 %2463 }
 0xd37   : > { %v2469_v30 = vsel %vm563_vm2, %v2464_v25, 0  ;;  %v3123_v25 = vld [vmem:[%s4426_s5 + $0xe] sm:$0x3] }
 0xd39   : > { %v3649_v60 = vpop.eup %3648 }
 0xd3a   : > { %v2462_v32 = vpop.permute.xlu1 %2461 }
 0xd3e   : > { %v2572_v34 = vpop.permute.xlu1 %2571 }
 0xd6d   : > { %v2020_v50 = vpop.f32.mrb[60].mxu1 }
 0xd6e   : > { %v3412_v55 = vpop.f32.mrb[61].mxu1  ;;  %v2026_v61 = vmul.f32 %v3647_v53, %v2020_v50 }
 0xd6f   : > { %v2023_v57 = vpop.f32.mrb[62].mxu1 }
 0xd70   : > { %v3413_v58 = vpop.f32.mrb[63].mxu1 }
 0xd75   : > { %v2130_v56 = vpop.f32.mrb[64].mxu1 }
 0xd76   : > { %v2136_v62 = vmul.f32 %v3649_v60, %v2130_v56  ;;  %v3424_v63 = vpop.f32.mrb[65].mxu1 }
 0xd77   : > { %v2133_v59 = vpop.f32.mrb[66].mxu1 }
 0xd78   : > { %v2137_v0 = vpack.c.bf16 %v2136_v62, %v2026_v61  ;;  %v3425_v26 = vpop.f32.mrb[67].mxu1 }
 0xd7a   : > { %3429 = vmatmul.mubr.msk.bf16.vlgmr.msra.gmra.mrb[52].mxu0 %vm563_vm2, %v2137_v0 }
 0xd7b   : > { %3440 = vmatprep.mubr.msk.bf16.mxu0 %vm3745_vm1, %v3744_v15 }
 0xd7e   : > { %v2233_v2 = vpop.f32.mrb[68].mxu1 }
 0xd7f   : > { %v3436_v3 = vpop.f32.mrb[69].mxu1  ;;  %v2239_v4 = vsel %vm610_vm4, %v2233_v2, -inf }
 0xd80   : > { %2240 = vmax.xlane.f32.xlu0 %v2239_v4  ;;  %v2236_v29 = vpop.f32.mrb[70].mxu1 }
 0xd81   : > { %v3437_v5 = vpop.f32.mrb[71].mxu1 }
 0xd86   : > { %v2343_v6 = vpop.f32.mrb[72].mxu1 }
 0xd87   : > { %v3448_v7 = vpop.f32.mrb[73].mxu1  ;;  %v2349_v8 = vsel %vm610_vm4, %v2343_v6, -inf }
 0xd88   : > { %2350 = vmax.xlane.f32.xlu0 %v2349_v8  ;;  %v2346_v9 = vpop.f32.mrb[74].mxu1 }
 0xd89   : > { %v3449_v10 = vpop.f32.mrb[75].mxu1 }
 0xd9e   : > { %2250 = vrot.lane.b32.xlu0 %v3928_v41, %s3765_s21  ;;  %s3069_s21 = sshll.u32 %s432_s20, 4 }
 0xd9f   : > { %s434_s30 = scalar_lea.vmem [#allocation2], %s3069_s21 }
 0xda0   : > { %s3003_s15 = sshll.u32 %s434_s30, 4  ;;  %s4375_s15 = int_to_ptr.vmem [resolvable:$true] %s3003_s15 }
 0xda1   : > { %s3680_s21 = scalar_lea.vmem %s4375_s15, 256 }
 0xda2   : > { %2573 = vrot.lane.b32.xlu0 %v3935_v42, %s3766_s22  ;;  %p3681_p11 = scmp.ne.s32.totalorder %s4375_s15, %s3680_s21  ;;  %s3684_s22 = sshll.u32 %s3769_s0, 4  ;;  %s3685_s22 = int_to_ptr.vmem [resolvable:$false] %s3684_s22 }
 0xda3   : > { %s3686_s23 = scalar_lea.vmem %s3685_s22, 512  ;;  %p3687_p0 = scmp.lt.s32.totalorder %s4375_s15, %s3685_s22 }
 0xda4   : > { %p3682_p12 = pnand %p3681_p11, %p3880_p5  ;;  %p3688_p1 = scmp.lt.s32.totalorder %s3686_s23, %s3680_s21 }
 0xda6   : > { %p3683_p13 = pneg %p3682_p12  ;;  %p3689_p2 = por %p3688_p1, %p3687_p0 }
 0xda8   : > { %p3690_p3 = pnand %p3689_p2, %p3683_p13 }
 0xe0d   : > { %v2241_v11 = vpop.xlane.xlu0 %2240 }
 0xe0e   : > { %v2242_v12 = vsub.f32 %v2233_v2, %v2241_v11 }
 0xe10   : > { %v2243_v13 = vmul.f32 1.442695, %v2242_v12 }
 0xe12   : > { %3650 = vpow2.f32 %v2243_v13 }
 0xe15   : > { %v2351_v14 = vpop.xlane.xlu0 %2350 }
 0xe16   : > { %v2352_v16 = vsub.f32 %v2343_v6, %v2351_v14 }
 0xe18   : > { %v2353_v17 = vmul.f32 1.442695, %v2352_v16 }
 0xe19   : > { %v2251_v18 = vpop.permute.xlu0 %2250 }
 0xe1a   : > { %3652 = vpow2.f32 %v2353_v17  ;;  %v2256_v1 = vsel %vm627_vm3, %v2251_v18, 0 }
 0xe1b   : > { %3439 = vmatpush3.bf16.msra.mxu0 %v2256_v1 }
 0xe1c   : > { %v3651_v19 = vpop.eup %3650  ;;  %3450 = vmatprep.subr.bf16.mxu0 %v3744_v15 }
 0xe1d   : > { %v2245_v21 = vsel %vm610_vm4, %v3651_v19, 0.0  ;;  %v2249_v22 = vpack.c.bf16 %v3651_v19, %v3651_v19  ;;  %v2574_v31 = vpop.permute.xlu0 %2573 }
 0xe1e   : > { %2246 = vadd.xlane.f32.xlu0 %v2245_v21  ;;  %v2579_v33 = vsel %vm563_vm2, %v2574_v31, 0 }
 0xe1f   : > { %3441 = vmatmul.mubr.msk.bf16.vlgmr.msra.gmra.mrb[56].mxu0 %vm610_vm4, %v2249_v22 }
 0xe20   : > { %3451 = vmatpush3.bf16.msra.mxu0 %v2366_v23  ;;  %3452 = vmatprep.mubr.msk.bf16.mxu0 %vm3745_vm1, %v3744_v15 }
 0xe21   : > { %3462 = vmatprep.subr.bf16.mxu0 %v3744_v15 }
 0xe24   : > { %v3653_v24 = vpop.eup %3652 }
 0xe25   : > { %v2355_v27 = vsel %vm610_vm4, %v3653_v24, 0.0  ;;  %v2359_v28 = vpack.c.bf16 %v3653_v24, %v3653_v24 }
 0xe26   : > { %2356 = vadd.xlane.f32.xlu1 %v2355_v27  ;;  %v2688_v27 = vsel %vm1009_vm5, %v3123_v25, 0  ;;  %v3592_v25 = vld [vmem:[%s4432_s11 + $0x10] sm:$0xff]  }
 0xe27   : > { %3453 = vmatmul.mubr.msk.bf16.vlgmr.msra.gmra.mrb[60].mxu0 %vm610_vm4, %v2359_v28 }
 0xe28   : > { %3464 = vmatprep.mubr.msk.bf16.mxu0 %vm3745_vm1, %v3744_v15 }
 0xe29   : > { %3463 = vmatpush3.bf16.xpose.msra.mxu0 %v2469_v30 }
 0xe2a   : > { %3474 = vmatprep.subr.bf16.mxu0 %v3744_v15 }
 0xe30   : > { %3465 = vmatmul.mubr.msk.bf16.vlgmr.msra.gmra.mrb[64].mxu0 %vm563_vm2, %v2462_v32 }
 0xe31   : > { %3475 = vmatpush3.bf16.xpose.msra.mxu0 %v2579_v33  ;;  %3476 = vmatprep.mubr.msk.bf16.mxu0 %vm3745_vm1, %v3744_v15 }
 0xe32   : > { %3486 = vmatprep.subr.bf16.mxu0 %v3744_v15 }
 0xe37   : > { %2632 = vrot.lane.b32.xlu1 %v3935_v42, %s3768_s16  ;;  %v2416_v42 = vsel %vm1009_vm5, %v3117_v43, 0 }
 0xe38   : > { %3477 = vmatmul.mubr.msk.bf16.vlgmr.msra.gmra.mrb[68].mxu0 %vm563_vm2, %v2572_v34  ;;  %3457 = vmatpush3.bf16.msra.mxu1 %v2416_v42 }
 0xe39   : > { %3488 = vmatprep.mubr.msk.bf16.mxu0 %vm3745_vm1, %v3744_v15  ;;  %3468 = vmatprep.subr.bf16.mxu1 %v3744_v15 }
 0xe3a   : > { %3487 = vmatpush3.bf16.msra.mxu0 %v2688_v27  ;;  %v3593_v27 = vld [vmem:[%s4432_s11 + $0x18] sm:$0xff]  }
 0xe3b   : > { %3500 = vmatprep.subr.bf16.mxu0 %v3744_v15 }
 0xe4d   : > { %v2180_v35 = vpop.f32.mrb[52].mxu0 }
 0xe4e   : > { %v4260_v36 = vadd.f32 %v2180_v35, %v4216_v44  ;;  %v3430_v37 = vpop.f32.mrb[53].mxu0 }
 0xe4f   : > { %v2183_v38 = vpop.f32.mrb[54].mxu0 }
 0xe50   : > { %v4263_v39 = vadd.f32 %v2183_v38, %v4219_v47  ;;  %v3431_v40 = vpop.f32.mrb[55].mxu0 }
 0xeab   : > { %v2247_v45 = vpop.xlane.xlu0 %2246 }
 0xeac   : > { %3654 = vrcp.f32 %v2247_v45 }
 0xeb3   : > { %v2357_v46 = vpop.xlane.xlu1 %2356 }
 0xeb4   : > { %3656 = vrcp.f32 %v2357_v46 }
 0xeb6   : > { %v3655_v47 = vpop.eup %3654 }
 0xeb7   : > { %v2633_v13 = vpop.permute.xlu1 %2632 }
 0xebe   : > { %v3657_v52 = vpop.eup %3656 }
 0xef2   : > { %v2292_v44 = vpop.f32.mrb[56].mxu0 }
 0xef3   : > { %v3442_v48 = vpop.f32.mrb[57].mxu0  ;;  %v2298_v50 = vmul.f32 %v3655_v47, %v2292_v44  ;;  %v3678_v47 = vld [vmem:[%s3894_s24] sm:$0xff] }
 0xef4   : > { %v2295_v49 = vpop.f32.mrb[58].mxu0 }
 0xef5   : > { %v3443_v51 = vpop.f32.mrb[59].mxu0  ;;  %v3125_v49 = vld [vmem:[%s4427_s6] ss:$0 sm:$0xff] }
 0xefa   : > { %v2402_v54 = vpop.f32.mrb[60].mxu0 }
 0xefb   : > { %v2408_v55 = vmul.f32 %v3657_v52, %v2402_v54  ;;  %v3454_v57 = vpop.f32.mrb[61].mxu0 }
 0xefc   : > { %v2405_v58 = vpop.f32.mrb[62].mxu0  ;;  %v3679_v57 = vld [vmem:[%s3894_s24 + $0x8] sm:$0xff]  ;;  %s3148_s24 = sshll.u32 %s3863_s29, 8  ;;  %s4380_s29 = scalar_lea.sflag [#allocation3], %s432_s20 }
 0xefd   : > { %v2409_v53 = vpack.c.bf16 %v2408_v55, %v2298_v50  ;;  %v3455_v60 = vpop.f32.mrb[63].mxu0  ;;  %s4373_s1 = scalar_lea.hbm %s4434_s13, %s3148_s24 }
 0xeff   : > { %3459 = vmatmul.mubr.msk.bf16.vlgmr.msra.gmra.mrb[76].mxu1 %vm563_vm2, %v2409_v53 }
 0xf00   : > { %3470 = vmatprep.mubr.msk.bf16.mxu1 %vm3745_vm1, %v3744_v15 }
 0xf03   : > { %v2505_v56 = vpop.f32.mrb[64].mxu0 }
 0xf04   : > { %v3466_v61 = vpop.f32.mrb[65].mxu0  ;;  %v2511_v62 = vsel %vm610_vm4, %v2505_v56, -inf }
 0xf05   : > { %2512 = vmax.xlane.f32.xlu0 %v2511_v62  ;;  %v2508_v63 = vpop.f32.mrb[66].mxu0 }
 0xf06   : > { %v3467_v59 = vpop.f32.mrb[67].mxu0 }
 0xf0b   : > { %v2615_v0 = vpop.f32.mrb[68].mxu0 }
 0xf0c   : > { %v3478_v26 = vpop.f32.mrb[69].mxu0  ;;  %v2621_v2 = vsel %vm610_vm4, %v2615_v0, -inf }
 0xf0d   : > { %2622 = vmax.xlane.f32.xlu0 %v2621_v2  ;;  %v2618_v3 = vpop.f32.mrb[70].mxu0 }
 0xf0e   : > { %v3479_v4 = vpop.f32.mrb[71].mxu0 }
 0xf23   : > { %2522 = vrot.lane.b32.xlu0 %v3928_v41, %s3768_s16  ;;  %v2638_v41 = vsel %vm627_vm3, %v2633_v13, 0 }
 0xf92   : > { %v2513_v29 = vpop.xlane.xlu0 %2512 }
 0xf93   : > { %v2514_v5 = vsub.f32 %v2505_v56, %v2513_v29 }
 0xf95   : > { %v2515_v6 = vmul.f32 1.442695, %v2514_v5  ;;  %v3588_v5 = vld [vmem:[%s4430_s9] sm:$0xff]  }
 0xf97   : > { %3658 = vpow2.f32 %v2515_v6  ;;  %v3589_v6 = vld [vmem:[%s4430_s9 + $0x8] sm:$0xff]  }
 0xf9a   : > { %v2623_v7 = vpop.xlane.xlu0 %2622 }
 0xf9b   : > { %v2624_v8 = vsub.f32 %v2615_v0, %v2623_v7 }
 0xf9d   : > { %v2625_v9 = vmul.f32 1.442695, %v2624_v8 }
 0xf9e   : > { %v2523_v10 = vpop.permute.xlu0 %2522 }
 0xf9f   : > { %3660 = vpow2.f32 %v2625_v9  ;;  %v2528_v11 = vsel %vm627_vm3, %v2523_v10, 0 }
 0xfa0   : > { %3469 = vmatpush3.bf16.msra.mxu1 %v2528_v11 }
 0xfa1   : > { %v3659_v12 = vpop.eup %3658  ;;  %3480 = vmatprep.subr.bf16.mxu1 %v3744_v15 }
 0xfa2   : > { %v2517_v14 = vsel %vm610_vm4, %v3659_v12, 0.0  ;;  %v2521_v16 = vpack.c.bf16 %v3659_v12, %v3659_v12 }
 0xfa3   : > { %2518 = vadd.xlane.f32.xlu1 %v2517_v14  ;;  %v3126_v14 = vld [vmem:[%s4428_s7] ss:$0 sm:$0xff] }
 0xfa4   : > { %3471 = vmatmul.mubr.msk.bf16.vlgmr.msra.gmra.mrb[80].mxu1 %vm610_vm4, %v2521_v16 }
 0xfa5   : > { %3481 = vmatpush3.bf16.msra.mxu1 %v2638_v41  ;;  %3482 = vmatprep.mubr.msk.bf16.mxu1 %vm3745_vm1, %v3744_v15 }
 0xfa6   : > { %3492 = vmatprep.subr.bf16.mxu1 %v3744_v15 }
 0xfa9   : > { %v3661_v17 = vpop.eup %3660 }
 0xfaa   : > { %v2627_v18 = vsel %vm610_vm4, %v3661_v17, 0.0  ;;  %v2631_v1 = vpack.c.bf16 %v3661_v17, %v3661_v17 }
 0xfab   : > { %2628 = vadd.xlane.f32.xlu0 %v2627_v18 }
 0xfac   : > { %3483 = vmatmul.mubr.msk.bf16.vlgmr.msra.gmra.mrb[84].mxu1 %vm610_vm4, %v2631_v1  ;;  %v3127_v1 = vld [vmem:[%s4429_s8] ss:$0 sm:$0xff] }
 0xfad   : > { %3496 = vmatprep.mubr.msk.bf16.mxu1 %vm3745_vm1, %v3744_v15  ;;  %3493 = vmatpush3.bf16.msra.mxu1 %v3588_v5 }
 0xfae   : > { %3494 = vmatprep.subr.bf16.mxu1 %v3744_v15 }
 0xfb1   : > { %3495 = vmatpush3.bf16.msra.mxu1 %v3589_v6 }
 0xfd2   : > { %v2452_v19 = vpop.f32.mrb[76].mxu1 }
 0xfd3   : > { %v2459_v20 = vadd.f32 %v2452_v19, %v4260_v36  ;;  %v3460_v21 = vpop.f32.mrb[77].mxu1 }
 0xfd4   : > { %v2455_v22 = vpop.f32.mrb[78].mxu1 }
 0xfd5   : > { %v2460_v23 = vadd.f32 %v2455_v22, %v4263_v39  ;;  %v3461_v24 = vpop.f32.mrb[79].mxu1 }
 0xfd6   : > { %v3591_v24 = vld [vmem:[%s4432_s11 + $0x8] sm:$0xff]  }
0x1030   : > { %v2519_v28 = vpop.xlane.xlu1 %2518 }
0x1031   : > { %3662 = vrcp.f32 %v2519_v28  ;;  %v3594_v28 = vld [vmem:[%s4432_s11 + $0x20] sm:$0xff]  }
0x1038   : > { %v2629_v30 = vpop.xlane.xlu0 %2628 }
0x1039   : > { %3664 = vrcp.f32 %v2629_v30  ;;  %v3595_v30 = vld [vmem:[%s4432_s11 + $0x28] sm:$0xff]  }
0x103b   : > { %v3663_v35 = vpop.eup %3662 }
0x1043   : > { %v3665_v36 = vpop.eup %3664 }
0x1077   : > { %v2564_v31 = vpop.f32.mrb[80].mxu1 }
0x1078   : > { %v3472_v32 = vpop.f32.mrb[81].mxu1  ;;  %v2570_v38 = vmul.f32 %v3663_v35, %v2564_v31  ;;  %v3596_v31 = vld [vmem:[%s4432_s11 + $0x30] sm:$0xff]  }
0x1079   : > { %v2567_v33 = vpop.f32.mrb[82].mxu1  ;;  %v3597_v32 = vld [vmem:[%s4432_s11 + $0x38] sm:$0xff]  }
0x107a   : > { %v3473_v34 = vpop.f32.mrb[83].mxu1  ;;  %v3128_v33 = vld [vmem:[%s4431_s10] ss:$0 sm:$0xff] }
0x107f   : > { %v2674_v37 = vpop.f32.mrb[84].mxu1 }
0x1080   : > { %v2680_v39 = vmul.f32 %v3665_v36, %v2674_v37  ;;  %v3484_v40 = vpop.f32.mrb[85].mxu1 }
0x1081   : > { %v2677_v43 = vpop.f32.mrb[86].mxu1 }
0x1082   : > { %v2681_v42 = vpack.c.bf16 %v2680_v39, %v2570_v38  ;;  %v3485_v45 = vpop.f32.mrb[87].mxu1 }
0x1084   : > { %3489 = vmatmul.mubr.msk.bf16.vlgmr.msra.gmra.mrb[72].mxu0 %vm563_vm2, %v2681_v42 }
0x1085   : > { %3516 = vmatprep.mubr.msk.bf16.mxu0 %vm3745_vm1, %v3744_v15 }
0x1157   : > { %v2724_v46 = vpop.f32.mrb[72].mxu0 }
0x1158   : > { %v2731_v44 = vadd.f32 %v2724_v46, %v2459_v20  ;;  %v3490_v48 = vpop.f32.mrb[73].mxu0 }
0x1159   : > { %v2727_v51 = vpop.f32.mrb[74].mxu0 }
0x115a   : > { %v2733_v52 = vadd.f32 %v3678_v47, %v2731_v44  ;;  %v2732_v54 = vadd.f32 %v2727_v51, %v2460_v23  ;;  %v3491_v50 = vpop.f32.mrb[75].mxu0  ;;  %v3590_v23 = vld [vmem:[%s4432_s11] sm:$0xff]  }
0x115b   : > { %3501 = vmatpush3.bf16.msra.mxu0 %v3590_v23  ;;  %v3134_v50 = vld [vmem:[%s4433_s12] ss:$0 sm:$0xff] }
0x115c   : > { %v4303_v55 = vadd.f32 %v3125_v49, %v2733_v52  ;;  %v2734_v58 = vadd.f32 %v3679_v57, %v2732_v54  ;;  %3502 = vmatprep.subr.bf16.mxu0 %v3744_v15 }
0x115e   : > { %v4306_v53 = vadd.f32 %v3125_v49, %v2734_v58  ;;  %v2746_v60 = vsel %vm447_vm0, %v4303_v55, 0.0 }
0x115f   : > { %2747 = vadd.xlane.f32.xlu0 %v2746_v60  ;;  %3503 = vmatpush3.bf16.msra.mxu0 %v3591_v24 }
0x1160   : > { %v2749_v56 = vsel %vm447_vm0, %v4306_v53, 0.0  ;;  %3504 = vmatprep.subr.bf16.mxu0 %v3744_v15 }
0x1161   : > { %2750 = vadd.xlane.f32.xlu1 %v2749_v56 }
0x1163   : > { %3505 = vmatpush3.bf16.msra.mxu0 %v3592_v25 }
0x1164   : > { %3506 = vmatprep.subr.bf16.mxu0 %v3744_v15 }
0x1167   : > { %3507 = vmatpush3.bf16.msra.mxu0 %v3593_v27 }
0x1168   : > { %3508 = vmatprep.subr.bf16.mxu0 %v3744_v15 }
0x116b   : > { %3509 = vmatpush3.bf16.msra.mxu0 %v3594_v28 }
0x116c   : > { %3510 = vmatprep.subr.bf16.mxu0 %v3744_v15 }
0x116f   : > { %3511 = vmatpush3.bf16.msra.mxu0 %v3595_v30 }
0x1170   : > { %3512 = vmatprep.subr.bf16.mxu0 %v3744_v15 }
0x1173   : > { %3513 = vmatpush3.bf16.msra.mxu0 %v3596_v31 }
0x1174   : > { %3514 = vmatprep.subr.bf16.mxu0 %v3744_v15 }
0x1177   : > { %3515 = vmatpush3.bf16.msra.mxu0 %v3597_v32 }
0x11ec   : > { %v2748_v61 = vpop.xlane.xlu0 %2747 }
0x11ed   : > { %v2752_v62 = vmul.f32 0.03125, %v2748_v61 }
0x11ee   : > { %v2751_v63 = vpop.xlane.xlu1 %2750 }
0x11ef   : > { %v2754_v59 = vsub.f32 %v4303_v55, %v2752_v62  ;;  %v2753_v0 = vmul.f32 0.03125, %v2751_v63 }
0x11f1   : > { %v2755_v26 = vsub.f32 %v4306_v53, %v2753_v0  ;;  %v2756_v2 = vmul.f32 %v2754_v59, %v2754_v59 }
0x11f3   : > { %v2758_v3 = vsel %vm447_vm0, %v2756_v2, 0.0  ;;  %v2757_v4 = vmul.f32 %v2755_v26, %v2755_v26 }
0x11f4   : > { %2759 = vadd.xlane.f32.xlu0 %v2758_v3 }
0x11f5   : > { %v2761_v29 = vsel %vm447_vm0, %v2757_v4, 0.0 }
0x11f6   : > { %2762 = vadd.xlane.f32.xlu1 %v2761_v29 }
0x1281   : > { %v2760_v7 = vpop.xlane.xlu0 %2759 }
0x1282   : > { %v2764_v8 = vmul.f32 0.03125, %v2760_v7 }
0x1283   : > { %v2763_v9 = vpop.xlane.xlu1 %2762 }
0x1284   : > { %v2766_v10 = vadd.f32 1e-05, %v2764_v8  ;;  %v2765_v11 = vmul.f32 0.03125, %v2763_v9 }
0x1286   : > { %3666 = vrsqrt.f32 %v2766_v10  ;;  %v2767_v12 = vadd.f32 1e-05, %v2765_v11 }
0x1288   : > { %3668 = vrsqrt.f32 %v2767_v12 }
0x1290   : > { %v3667_v13 = vpop.eup %3666 }
0x1291   : > { %v2770_v16 = vmul.f32 %v3667_v13, %v2754_v59 }
0x1292   : > { %v3669_v41 = vpop.eup %3668 }
0x1293   : > { %v2778_v17 = vmul.f32 %v3126_v14, %v2770_v16  ;;  %v2771_v18 = vmul.f32 %v3669_v41, %v2755_v26 }
0x1295   : > { %v2779_v19 = vmul.f32 %v3126_v14, %v2771_v18  ;;  %v2786_v20 = vadd.f32 %v3127_v1, %v2778_v17 }
0x1297   : > { %v2787_v21 = vadd.f32 %v3127_v1, %v2779_v19 }
0x1299   : > { %v2788_v22 = vpack.c.bf16 %v2787_v21, %v2786_v20 }
0x129b   : > { %3497 = vmatmul.mubr.msk.bf16.vlgmr.msra.gmra.mrb[88].mxu1 %vm447_vm0, %v2788_v22 }
0x136e   : > { %v2849_v34 = vpop.f32.mrb[88].mxu1 }
0x136f   : > { %v2850_v35 = vadd.f32 %v3128_v33, %v2849_v34  ;;  %v3498_v36 = vpop.f32.mrb[89].mxu1 }
0x1370   : > { %v2852_v37 = vpop.f32.mrb[90].mxu1 }
0x1371   : > { %v3132_v38 = vmul.f32 -1.702, %v2850_v35  ;;  %v2853_v39 = vadd.f32 %v3128_v33, %v2852_v37  ;;  %v3499_v40 = vpop.f32.mrb[91].mxu1 }
0x1373   : > { %v2860_v43 = vmul.f32 1.442695, %v3132_v38  ;;  %v3133_v42 = vmul.f32 -1.702, %v2853_v39 }
0x1375   : > { %3670 = vpow2.f32 %v2860_v43  ;;  %v2862_v15 = vmul.f32 1.442695, %v3133_v42 }
0x1377   : > { %3672 = vpow2.f32 %v2862_v15 }
0x137f   : > { %v3671_v45 = vpop.eup %3670 }
0x1380   : > { %v2864_v46 = vadd.f32 1.0, %v3671_v45 }
0x1381   : > { %v3673_v44 = vpop.eup %3672 }
0x1382   : > { %3674 = vrcp.f32 %v2864_v46  ;;  %v2865_v48 = vadd.f32 1.0, %v3673_v44 }
0x1384   : > { %3676 = vrcp.f32 %v2865_v48 }
0x138c   : > { %v3675_v49 = vpop.eup %3674 }
0x138d   : > { %v2870_v47 = vmul.f32 %v3675_v49, %v2850_v35 }
0x138e   : > { %v3677_v51 = vpop.eup %3676 }
0x138f   : > { %v2871_v52 = vmul.f32 %v3677_v51, %v2853_v39 }
0x1391   : > { %v2872_v54 = vpack.c.bf16 %v2871_v52, %v2870_v47 }
0x1393   : > { %3517 = vmatmul.mubr.bf16.vlgmr.msra.gmra.mrb[76].mxu0 %v2872_v54 }
0x1466   : > { %v2978_v57 = vpop.f32.mrb[76].mxu0 }
0x1467   : > { %v2979_v58 = vadd.f32 %v3134_v50, %v2978_v57  ;;  %v3518_v60 = vpop.f32.mrb[77].mxu0 }
0x1468   : > { %v2981_v56 = vpop.f32.mrb[78].mxu0 }
0x1469   : > { %v2985_v61 = vadd.f32 %v2979_v58, %v4303_v55  ;;  %v2982_v62 = vadd.f32 %v3134_v50, %v2981_v56  ;;  %v3519_v63 = vpop.f32.mrb[79].mxu0 }
0x146b   : > { %2987 = vst.msk [vmem:[%s434_s30] sm:$0xff] %vm447_vm0, %v2985_v61  ;;  %v2986_v59 = vadd.f32 %v2982_v62, %v4306_v53 }
0x146d   : > { %2988 = vst.msk [vmem:[%s434_s30 + $0x8] sm:$0xff] %vm447_vm0, %v2986_v59 }
0x146e   : > { %3693 = shalt.err (!%p3690_p3)
}
0x146f   : > { %s3694_s20 = scalar_lea.hbm %s4373_s1, 256  ;;  %s3698_s16 = scalar_lea.hbm %s4434_s13, 512 }
0x1470   : > { %p3695_p4 = scmp.ne.s32.totalorder %s4373_s1, %s3694_s20  ;;  %p3699_p9 = scmp.lt.u32.totalorder %s4373_s1, %s4434_s13 }
0x1471   : > { %p3700_p10 = scmp.lt.u32.totalorder %s3698_s16, %s3694_s20  ;;  %p3702_p12 = scmp.lt.u32.totalorder %s3694_s20, %s4373_s1 }
0x1472   : > { %p3696_p7 = pnand %p3695_p4, %p3880_p5 }
0x1473   : > { %p3701_p11 = por %p3700_p10, %p3699_p9 }
0x1474   : > { %p3697_p8 = pneg %p3696_p7 }
0x1475   : > { %p3703_p13 = por %p3702_p12, %p3701_p11 }
0x1477   : > { %p3704_p0 = pnand %p3703_p13, %p3697_p8 }
0x1479   : > { %3707 = shalt.err (!%p3704_p0)
}
0x147a   : > { %s3770_s21 = smov 128   ;;  %s3771_s23 = smov 8  }
0x147b   : > { %3520 = dma.vmem_to_hbm [thread:$0]  (%p3880_p5), %s4375_s15, 256, %s4373_s1, %s4380_s29, %s3770_s21, %s3770_s21, %s3771_s23  }
0x147c PF: > { %p3526_p1 = scmp.ge.s32.totalorder %s3742_s28, 2  ;;  %s3018_s30 = sand.u32 1, %s3730_s25  }
0x147d   : > { %s3019_s20 = scalar_lea.sflag [#allocation3], %s3018_s30 }
0x147e   : > { %p3523_p2 = pnand %p3526_p1, %p3884_p6 }
0x1480   : > { %3725 = dma.done.wait (!%p3523_p2), %s3019_s20, 256  }
0x1481   : > { %3727 = vsyncadd (!%p3523_p2), %s3019_s20, 4294967040  ;;  %p23_p3 = scmp.ge.s32.totalorder %s3867_s14, 4   ;;  %s4441_s25 = smov %s3734_s26 }
0x1482   : > { %s4442_s26 = smov %s3738_s27  ;;  %s4443_s27 = smov %s3878_s17 }
0x1483   : > { %s4444_s28 = smov %s3867_s14  ;;  %25 = sbr.rel (!%p23_p3) target bundleno = 6 (0x6), region = 114 }
0x148a   :  { %3024 = vsyncpa [#allocation3], 1 }
0x148b   :  { %3026 = vsyncpa [#allocation3 + $0x1], 1 }

</bundles_post_ra>
